<compile_context>
chip_gen: v7x
topology: tpu7x:2x2x1
jax: 0.10.0
libtpu: 0.0.40
codegen_flags: <defaults>
</compile_context>

<pallas_src>
import jax
import jax.numpy as jnp
from jax.experimental import pallas as pl
from jax.experimental.pallas import tpu as pltpu

HIDDEN = 128     # hidden_size in the PyTorch module
N_TARGETS = 1
NUM_LAYERS = 3   # -> layers: F->H, H->H, H->H, H->1


def _round_up(n, m):
    return ((n + m - 1) // m) * m


def mlp_kernel(x_ref, w1_ref, b1_ref, w2_ref, b2_ref, w3_ref, b3_ref,
               w4_ref, b4_ref, o_ref):
    # x_ref: (F_pad, tile_m)   weights: (out, in)   biases: (out, 1)
    # All matmuls are M=128 x K x N=tile_m on the MXU; ReLU / bias add on the VPU.
    h = jnp.dot(w1_ref[...], x_ref[...],
                preferred_element_type=jnp.float32) + b1_ref[...]
    h = jnp.maximum(h, 0.0)
    h = jnp.dot(w2_ref[...], h,
                preferred_element_type=jnp.float32) + b2_ref[...]
    h = jnp.maximum(h, 0.0)
    h = jnp.dot(w3_ref[...], h,
                preferred_element_type=jnp.float32) + b3_ref[...]
    h = jnp.maximum(h, 0.0)
    # Dropout(p=0) == identity (TODO(synk): no dropout masking needed for p=0)
    # Final Linear(H -> 1): VPU multiply + sublane reduce (XLU) instead of an
    # N=1 MXU matmul; result is already lane-dense with shape (1, tile_m).
    o_ref[...] = jnp.sum(h * w4_ref[...], axis=0, keepdims=True) + b4_ref[...]


def mlp_forward(x, params, *, tile_m=256):
    """x: (B, F) float32.  params: PyTorch-layout weights/biases.  Returns (B, 1)."""
    B, F = x.shape
    H = params["w1"].shape[0]

    # Don't over-pad tiny batches, but keep tile_m a multiple of 128 lanes.
    tile_m = min(tile_m, _round_up(B, 128))
    B_pad = _round_up(B, tile_m)
    F_pad = _round_up(F, 8)

    # Feature-major layout: batch on the lane axis.
    x_t = jnp.pad(x.T, ((0, F_pad - F), (0, B_pad - B)))            # (F_pad, B_pad)
    w1 = jnp.pad(params["w1"], ((0, 0), (0, F_pad - F)))            # (H, F_pad)
    b1 = params["b1"].reshape(H, 1)
    w2, b2 = params["w2"], params["b2"].reshape(H, 1)
    w3, b3 = params["w3"], params["b3"].reshape(H, 1)
    w4 = params["w4"].reshape(H, 1)                                 # (1, H) -> (H, 1)
    b4 = params["b4"].reshape(1, 1)

    grid = (B_pad // tile_m,)
    resident = lambda shape: pl.BlockSpec(shape, lambda i: (0, 0))  # VMEM-resident

    out = pl.pallas_call(
        mlp_kernel,
        out_shape=jax.ShapeDtypeStruct((1, B_pad), jnp.float32),
        grid_spec=pltpu.PrefetchScalarGridSpec(
            num_scalar_prefetch=0,
            grid=grid,
            in_specs=[
                pl.BlockSpec((F_pad, tile_m), lambda i: (0, i)),    # x tile (lane-dense)
                resident(w1.shape), resident(b1.shape),
                resident(w2.shape), resident(b2.shape),
                resident(w3.shape), resident(b3.shape),
                resident(w4.shape), resident(b4.shape),
            ],
            out_specs=pl.BlockSpec((1, tile_m), lambda i: (0, i)),  # lane-dense output
        ),
        compiler_params=pltpu.CompilerParams(
            dimension_semantics=("parallel",)),                     # megacore sharding
    )(x_t, w1, b1, w2, b2, w3, b3, w4, b4)

    return out[0, :B].reshape(B, N_TARGETS)


def init_params(key, n_features, hidden, n_targets):
    """PyTorch nn.Linear layout: W is (out, in), b is (out,)."""
    ks = jax.random.split(key, 8)

    def lin(kw, kb, fan_in, fan_out):
        bound = 1.0 / jnp.sqrt(fan_in)
        w = jax.random.uniform(kw, (fan_out, fan_in), jnp.float32, -bound, bound)
        b = jax.random.uniform(kb, (fan_out,), jnp.float32, -bound, bound)
        return w, b

    w1, b1 = lin(ks[0], ks[1], n_features, hidden)
    w2, b2 = lin(ks[2], ks[3], hidden, hidden)
    w3, b3 = lin(ks[4], ks[5], hidden, hidden)
    w4, b4 = lin(ks[6], ks[7], hidden, n_targets)
    return dict(w1=w1, b1=b1, w2=w2, b2=b2, w3=w3, b3=b3, w4=w4, b4=b4)


def mlp_reference(x, p):
    h = jnp.maximum(x @ p["w1"].T + p["b1"], 0.0)
    h = jnp.maximum(h @ p["w2"].T + p["b2"], 0.0)
    h = jnp.maximum(h @ p["w3"].T + p["b3"], 0.0)
    return h @ p["w4"].T + p["b4"]


if __name__ == "__main__":
    key = jax.random.PRNGKey(0)
    k_x, k_p = jax.random.split(key)

    # Small-ish demo: B not a multiple of tile_m (exercises padding) and a grid
    # of 2 parallel steps (keeps both v7x TensorCores busy).
    B, F = 300, 32
    x = jax.random.normal(k_x, (B, F), jnp.float32)
    params = init_params(k_p, F, HIDDEN, N_TARGETS)

    out = jax.block_until_ready(mlp_forward(x, params))

    ref = mlp_reference(x, params)
    assert out.shape == (B, N_TARGETS)
    assert jnp.allclose(out, ref, atol=1e-4, rtol=1e-4), "mismatch vs JAX reference"

    print("KERNEL_OK")
</pallas_src>

<mosaic_0001>
module attributes {stable_mosaic.version = 11 : i64} {
  func.func @mlp_kernel(%arg0: i32, %arg1: memref<32x256xf32, #tpu.memory_space<vmem>>, %arg2: memref<128x32xf32, #tpu.memory_space<vmem>>, %arg3: memref<128x1xf32, #tpu.memory_space<vmem>>, %arg4: memref<128x128xf32, #tpu.memory_space<vmem>>, %arg5: memref<128x1xf32, #tpu.memory_space<vmem>>, %arg6: memref<128x128xf32, #tpu.memory_space<vmem>>, %arg7: memref<128x1xf32, #tpu.memory_space<vmem>>, %arg8: memref<128x1xf32, #tpu.memory_space<vmem>>, %arg9: memref<1x1xf32, #tpu.memory_space<vmem>>, %arg10: memref<1x256xf32, #tpu.memory_space<vmem>>) attributes {dimension_semantics = [#tpu.dimension_semantics<parallel>], iteration_bounds = array<i64: 2>, scalar_prefetch = 0 : i64, scratch_operands = 0 : i64, tpu.core_type = #tpu.core_type<tc>, window_params = [{transform_indices = @transform_0, window_bounds = array<i64: 32, 256>}, {pipeline_mode = #tpu.pipeline_mode<synchronous>, transform_indices = @transform_1, window_bounds = array<i64: 128, 32>}, {pipeline_mode = #tpu.pipeline_mode<synchronous>, transform_indices = @transform_2, window_bounds = array<i64: 128, 1>}, {pipeline_mode = #tpu.pipeline_mode<synchronous>, transform_indices = @transform_3, window_bounds = array<i64: 128, 128>}, {pipeline_mode = #tpu.pipeline_mode<synchronous>, transform_indices = @transform_4, window_bounds = array<i64: 128, 1>}, {pipeline_mode = #tpu.pipeline_mode<synchronous>, transform_indices = @transform_5, window_bounds = array<i64: 128, 128>}, {pipeline_mode = #tpu.pipeline_mode<synchronous>, transform_indices = @transform_6, window_bounds = array<i64: 128, 1>}, {pipeline_mode = #tpu.pipeline_mode<synchronous>, transform_indices = @transform_7, window_bounds = array<i64: 128, 1>}, {pipeline_mode = #tpu.pipeline_mode<synchronous>, transform_indices = @transform_8, window_bounds = array<i64: 1, 1>}, {transform_indices = @transform_9, window_bounds = array<i64: 1, 256>}]} {
    %c0 = arith.constant 0 : index
    %c0_0 = arith.constant 0 : index
    %0 = vector.load %arg2[%c0, %c0_0] : memref<128x32xf32, #tpu.memory_space<vmem>>, vector<128x32xf32>
    %c0_1 = arith.constant 0 : index
    %c0_2 = arith.constant 0 : index
    %1 = vector.load %arg1[%c0_1, %c0_2] : memref<32x256xf32, #tpu.memory_space<vmem>>, vector<32x256xf32>
    %cst = arith.constant dense<0.000000e+00> : vector<128x256xf32>
    %2 = tpu.matmul %0, %1, %cst {dimension_numbers = #tpu.dot_dimension_numbers<[1], [0], [0], [1], [0, 0, 1, 1], [], []>} : vector<128x32xf32>, vector<32x256xf32>, vector<128x256xf32> -> vector<128x256xf32>
    %c0_3 = arith.constant 0 : index
    %c0_4 = arith.constant 0 : index
    %3 = vector.load %arg3[%c0_3, %c0_4] : memref<128x1xf32, #tpu.memory_space<vmem>>, vector<128x1xf32>
    %4 = vector.broadcast %3 : vector<128x1xf32> to vector<128x256xf32>
    %5 = arith.addf %2, %4 : vector<128x256xf32>
    %cst_5 = arith.constant 0.000000e+00 : f32
    %6 = vector.broadcast %cst_5 : f32 to vector<128x256xf32>
    %7 = arith.maximumf %5, %6 : vector<128x256xf32>
    %c0_6 = arith.constant 0 : index
    %c0_7 = arith.constant 0 : index
    %8 = vector.load %arg4[%c0_6, %c0_7] : memref<128x128xf32, #tpu.memory_space<vmem>>, vector<128x128xf32>
    %cst_8 = arith.constant dense<0.000000e+00> : vector<128x256xf32>
    %9 = tpu.matmul %8, %7, %cst_8 {dimension_numbers = #tpu.dot_dimension_numbers<[1], [0], [0], [1], [0, 0, 1, 1], [], []>} : vector<128x128xf32>, vector<128x256xf32>, vector<128x256xf32> -> vector<128x256xf32>
    %c0_9 = arith.constant 0 : index
    %c0_10 = arith.constant 0 : index
    %10 = vector.load %arg5[%c0_9, %c0_10] : memref<128x1xf32, #tpu.memory_space<vmem>>, vector<128x1xf32>
    %11 = vector.broadcast %10 : vector<128x1xf32> to vector<128x256xf32>
    %12 = arith.addf %9, %11 : vector<128x256xf32>
    %cst_11 = arith.constant 0.000000e+00 : f32
    %13 = vector.broadcast %cst_11 : f32 to vector<128x256xf32>
    %14 = arith.maximumf %12, %13 : vector<128x256xf32>
    %c0_12 = arith.constant 0 : index
    %c0_13 = arith.constant 0 : index
    %15 = vector.load %arg6[%c0_12, %c0_13] : memref<128x128xf32, #tpu.memory_space<vmem>>, vector<128x128xf32>
    %cst_14 = arith.constant dense<0.000000e+00> : vector<128x256xf32>
    %16 = tpu.matmul %15, %14, %cst_14 {dimension_numbers = #tpu.dot_dimension_numbers<[1], [0], [0], [1], [0, 0, 1, 1], [], []>} : vector<128x128xf32>, vector<128x256xf32>, vector<128x256xf32> -> vector<128x256xf32>
    %c0_15 = arith.constant 0 : index
    %c0_16 = arith.constant 0 : index
    %17 = vector.load %arg7[%c0_15, %c0_16] : memref<128x1xf32, #tpu.memory_space<vmem>>, vector<128x1xf32>
    %18 = vector.broadcast %17 : vector<128x1xf32> to vector<128x256xf32>
    %19 = arith.addf %16, %18 : vector<128x256xf32>
    %cst_17 = arith.constant 0.000000e+00 : f32
    %20 = vector.broadcast %cst_17 : f32 to vector<128x256xf32>
    %21 = arith.maximumf %19, %20 : vector<128x256xf32>
    %c0_18 = arith.constant 0 : index
    %c0_19 = arith.constant 0 : index
    %22 = vector.load %arg8[%c0_18, %c0_19] : memref<128x1xf32, #tpu.memory_space<vmem>>, vector<128x1xf32>
    %23 = vector.broadcast %22 : vector<128x1xf32> to vector<128x256xf32>
    %24 = arith.mulf %21, %23 : vector<128x256xf32>
    %cst_20 = arith.constant dense<0.000000e+00> : vector<256xf32>
    %25 = vector.multi_reduction <add>, %24, %cst_20 [0] : vector<128x256xf32> to vector<256xf32>
    %26 = vector.shape_cast %25 : vector<256xf32> to vector<1x256xf32>
    %c0_21 = arith.constant 0 : index
    %c0_22 = arith.constant 0 : index
    %27 = vector.load %arg9[%c0_21, %c0_22] : memref<1x1xf32, #tpu.memory_space<vmem>>, vector<1x1xf32>
    %28 = vector.broadcast %27 : vector<1x1xf32> to vector<1x256xf32>
    %29 = arith.addf %26, %28 : vector<1x256xf32>
    %c0_23 = arith.constant 0 : index
    %c0_24 = arith.constant 0 : index
    %30 = vector.load %arg10[%c0_23, %c0_24] : memref<1x256xf32, #tpu.memory_space<vmem>>, vector<1x256xf32>
    tpu.vector_store %arg10[%c0_23, %c0_24], %29 {strides = array<i32>} : memref<1x256xf32, #tpu.memory_space<vmem>>, vector<1x256xf32>,
    return
  }
  func.func @transform_0(%arg0: i32) -> (i32, i32) {
    %c0_i32 = arith.constant 0 : i32
    %c0_i32_0 = arith.constant 0 : i32
    return %c0_i32, %arg0 : i32, i32
  }
  func.func @transform_1(%arg0: i32) -> (i32, i32) {
    %c0_i32 = arith.constant 0 : i32
    %c0_i32_0 = arith.constant 0 : i32
    %c0_i32_1 = arith.constant 0 : i32
    return %c0_i32, %c0_i32_0 : i32, i32
  }
  func.func @transform_2(%arg0: i32) -> (i32, i32) {
    %c0_i32 = arith.constant 0 : i32
    %c0_i32_0 = arith.constant 0 : i32
    %c0_i32_1 = arith.constant 0 : i32
    return %c0_i32, %c0_i32_0 : i32, i32
  }
  func.func @transform_3(%arg0: i32) -> (i32, i32) {
    %c0_i32 = arith.constant 0 : i32
    %c0_i32_0 = arith.constant 0 : i32
    %c0_i32_1 = arith.constant 0 : i32
    return %c0_i32, %c0_i32_0 : i32, i32
  }
  func.func @transform_4(%arg0: i32) -> (i32, i32) {
    %c0_i32 = arith.constant 0 : i32
    %c0_i32_0 = arith.constant 0 : i32
    %c0_i32_1 = arith.constant 0 : i32
    return %c0_i32, %c0_i32_0 : i32, i32
  }
  func.func @transform_5(%arg0: i32) -> (i32, i32) {
    %c0_i32 = arith.constant 0 : i32
    %c0_i32_0 = arith.constant 0 : i32
    %c0_i32_1 = arith.constant 0 : i32
    return %c0_i32, %c0_i32_0 : i32, i32
  }
  func.func @transform_6(%arg0: i32) -> (i32, i32) {
    %c0_i32 = arith.constant 0 : i32
    %c0_i32_0 = arith.constant 0 : i32
    %c0_i32_1 = arith.constant 0 : i32
    return %c0_i32, %c0_i32_0 : i32, i32
  }
  func.func @transform_7(%arg0: i32) -> (i32, i32) {
    %c0_i32 = arith.constant 0 : i32
    %c0_i32_0 = arith.constant 0 : i32
    %c0_i32_1 = arith.constant 0 : i32
    return %c0_i32, %c0_i32_0 : i32, i32
  }
  func.func @transform_8(%arg0: i32) -> (i32, i32) {
    %c0_i32 = arith.constant 0 : i32
    %c0_i32_0 = arith.constant 0 : i32
    %c0_i32_1 = arith.constant 0 : i32
    return %c0_i32, %c0_i32_0 : i32, i32
  }
  func.func @transform_9(%arg0: i32) -> (i32, i32) {
    %c0_i32 = arith.constant 0 : i32
    %c0_i32_0 = arith.constant 0 : i32
    return %c0_i32, %arg0 : i32, i32
  }
}

</mosaic_0001>

<bundles_post_ra>
// kernel: tpu_custom_call.1
= control target key start
LH: loop header
LB: loop body
LE: loop exit
PB: predicated region body
PF: predicated region fallthrough
CT: control target
= control target key end

     0   :  { %s2449_s0 = inlined_call_operand.vmem [shape: f32[32,512], index: 0, kind: input, shape index: {}]   ;;  %s2450_s1 = inlined_call_operand.vmem [shape: f32[128,32], index: 1, kind: input, shape index: {}]   ;;  %s2451_s2 = inlined_call_operand.vmem [shape: f32[128,1], index: 2, kind: input, shape index: {}]   ;;  %s2452_s3 = inlined_call_operand.vmem [shape: f32[128,128], index: 3, kind: input, shape index: {}]   ;;  %s2453_s4 = inlined_call_operand.vmem [shape: f32[128,1], index: 4, kind: input, shape index: {}]   ;;  %s2454_s5 = inlined_call_operand.vmem [shape: f32[128,128], index: 5, kind: input, shape index: {}]   ;;  %s2455_s6 = inlined_call_operand.vmem [shape: f32[128,1], index: 6, kind: input, shape index: {}]   ;;  %s2456_s7 = inlined_call_operand.vmem [shape: f32[128,1], index: 7, kind: input, shape index: {}]   ;;  %s2457_s8 = inlined_call_operand.<no memory space> [shape: f32[1,1], index: 8, kind: input, shape index: {}]   ;;  %s2458_s9 = inlined_call_operand.hbm [shape: f32[1,512], index: 9, kind: output, shape index: {}]  }
   0x1   :  { %v14_v0 = vstv %s2457_s8 }
   0x2   :  { %15 = vst [vmem:[#allocation2] sm:$0x1] %v14_v0 }
   0x3   :  { %16 = vsyncpa [#allocation5], 0 }
   0x4   :  { %18 = vsyncpa [#allocation5 + $0x1], 0  ;;  %s1899_s11 = smov 0   ;;  %s1901_s12 = smov 0  }
   0x5   :  { %s1903_s13 = smov 0   ;;  %s1905_s14 = smov 0  }
   0x6 LB: > { %s1625_s8 = sadd.s32 4294967295, %s1840_s14   ;;  %s1626_s15 = sadd.s32 4294967294, %s1840_s14   ;;  %s1840_s14 = sphi %s1905_s14, %s2464_s14   ;;  %s1836_s13 = sphi %s1903_s13, %s2463_s13   ;;  %s1832_s12 = sphi %s1901_s12, %s2462_s12   ;;  %s1828_s11 = sphi %s1899_s11, %s2461_s11  }
   0x7   : > { %s1922_s16 = sadd.s32 1, %s1840_s14   ;;  %s31_s17 = sadd.s32 1, %s1836_s13 }
   0x8   : > { %s28_s18 = ssub.s32 %s1840_s14, %s1922_s16  ;;  %p38_p0 = scmp.ne.s32.totalorder %s1836_s13, %s1832_s12 }
   0x9   : > { %p29_p1 = scmp.eq.s32.totalorder %s28_s18, 0  ;;  %p39_p2 = scmp.eq.s32.totalorder %s1840_s14, 0 }
   0xa   : > { %p236_p3 = scmp.eq.s32.totalorder %s1625_s8, 1  ;;  %p241_p4 = scmp.ne.s32.totalorder %s1832_s12, %s1828_s11 }
   0xb   : > { %s1935_s19 = scalar_select %p29_p1, %s1836_s13, %s31_s17  }
   0xc   : > { %p40_p5 = por %p39_p2, %p38_p0  ;;  %p1937_p6 = por %p236_p3, %p38_p0 }
   0xd   : > { %p242_p7 = scmp.eq.s32.totalorder %s1626_s15, 1  ;;  %p1628_p9 = scmp.ge.s32.totalorder %s1840_s14, 2 }
   0xf   : > { %p1941_p8 = por %p242_p7, %p241_p4  ;;  %282 = sbr.rel (%p1628_p9) target bundleno = 30 (0x1e), region = 48 }
  0x16   : > { %285 = sbr.rel (!%p40_p5) target bundleno = 30 (0x1e), region = 52  ;;  %s287_s22 = sand.u32 (%p40_p5), 1, %s1836_s13  }
  0x17   : > { %s1656_s23 = sshll.u32 (%p40_p5), %s1840_s14, 4  ;;  %s1629_s24 = sshll.u32 (%p40_p5), %s287_s22, 6 }
  0x18   : > { %s292_s27 = scalar_lea.vmem (%p40_p5), %s2449_s0, %s1656_s23  ;;  %s289_s28 = scalar_lea.vmem (%p40_p5), [#allocation3], %s1629_s24 }
  0x19   : > { %v305_v1 = vld [vmem:[%s292_s27] sm:$0xff] (%p40_p5)  ;;  %v307_v2 = vld [vmem:[%s292_s27 + $0x8] sm:$0xff] (%p40_p5) }
  0x1a   : > { %v309_v3 = vld [vmem:[%s292_s27 + $0x20] sm:$0xff] (%p40_p5)  ;;  %306 = vst [vmem:[%s289_s28] sm:$0xff] (%p40_p5), %v305_v1  ;;  %308 = vst [vmem:[%s289_s28 + $0x8] sm:$0xff] (%p40_p5), %v307_v2  ;;  %v311_v4 = vld [vmem:[%s292_s27 + $0x28] sm:$0xff] (%p40_p5) }
  0x1b   : > { %310 = vst [vmem:[%s289_s28 + $0x10] sm:$0xff] (%p40_p5), %v309_v3  ;;  %v313_v5 = vld [vmem:[%s292_s27 + $0x40] sm:$0xff] (%p40_p5)  ;;  %v315_v6 = vld [vmem:[%s292_s27 + $0x48] sm:$0xff] (%p40_p5)  ;;  %312 = vst [vmem:[%s289_s28 + $0x18] sm:$0xff] (%p40_p5), %v311_v4 }
  0x1c   : > { %314 = vst [vmem:[%s289_s28 + $0x20] sm:$0xff] (%p40_p5), %v313_v5  ;;  %316 = vst [vmem:[%s289_s28 + $0x28] sm:$0xff] (%p40_p5), %v315_v6  ;;  %v317_v7 = vld [vmem:[%s292_s27 + $0x60] sm:$0xff] (%p40_p5)  ;;  %v319_v8 = vld [vmem:[%s292_s27 + $0x68] sm:$0xff] (%p40_p5) }
  0x1d   : > { %318 = vst [vmem:[%s289_s28 + $0x30] sm:$0xff] %v317_v7  ;;  %320 = vst [vmem:[%s289_s28 + $0x38] sm:$0xff] %v319_v8 }
  0x1e PF: > { %p1632_p10 = scmp.ge.s32.totalorder %s1840_s14, 1  ;;  %p325_p11 = scmp.lt.s32.totalorder %s1840_s14, 3 }
  0x20   : > { %p326_p12 = pnand %p1632_p10, %p325_p11 }
  0x21   : > { %v395_v9 = vld [vmem:[%s2451_s2 + $0x10] sm:$0xff] (!%p326_p12)  ;;  %v393_v10 = vld [vmem:[%s2451_s2] sm:$0xff] (!%p326_p12)  ;;  %s1962_s17 = sand.u32 (!%p326_p12), 1, %s1832_s12   ;;  %v1842_v11 = vmov (!%p326_p12), 0   ;;  %v396_v12 = vld [vmem:[%s2451_s2 + $0x18] sm:$0xff] (!%p326_p12)  ;;  %v1843_v17 = vmov (!%p326_p12), 0.0  }
  0x22   : > { %329 = sbr.rel (%p326_p12) target bundleno = 913 (0x391), region = 75  ;;  %1777 = vset.pattern.permute.xlu1 (!%p326_p12), %v1842_v11  ;;  %1776 = vset.pattern.permute.xlu0 (!%p326_p12), %v1842_v11  ;;  %s1633_s18 = sshll.u32 (!%p326_p12), %s1962_s17, 6  ;;  %v394_v13 = vld [vmem:[%s2451_s2 + $0x8] sm:$0xff] (!%p326_p12)  ;;  %v397_v27 = vld [vmem:[%s2451_s2 + $0x20] sm:$0xff] (!%p326_p12)  ;;  %v400_v29 = vld [vmem:[%s2451_s2 + $0x38] sm:$0xff] (!%p326_p12)  ;;  %vm489_vm0 = vcmask (!%p326_p12), 261120  }
  0x23   : > { %421 = vperm.xlu1 (!%p326_p12), %1777, %v395_v9   ;;  %411 = vperm.xlu0 (!%p326_p12), %1776, %v393_v10   ;;  %s334_s26 = scalar_lea.vmem (!%p326_p12), [#allocation3], %s1633_s18  ;;  %v398_v26 = vld [vmem:[%s2451_s2 + $0x28] sm:$0xff] (!%p326_p12)  ;;  %v399_v30 = vld [vmem:[%s2451_s2 + $0x30] sm:$0xff] (!%p326_p12)  ;;  %v369_v31 = vld [vmem:[%s2450_s1] sm:$0xff] (!%p326_p12)  ;;  %s1634_s27 = sshll.u32 (!%p326_p12), %s1962_s17, 1 }
  0x24   : > { %v386_v14 = vld [vmem:[%s334_s26 + $0x8] sm:$0xff] (!%p326_p12)  ;;  %v388_v15 = vld [vmem:[%s334_s26 + $0x18] sm:$0xff] (!%p326_p12)  ;;  %v385_v16 = vld [vmem:[%s334_s26] sm:$0xff] (!%p326_p12)  ;;  %602 = vmatprep.mubr.f32.mxu0 (!%p326_p12), %v1843_v17  ;;  %650 = vmatprep.mubr.f32.mxu1 (!%p326_p12), %v1843_v17  ;;  %s1657_s28 = sshll.u32 (!%p326_p12), %s1625_s8, 5  ;;  %s366_s29 = scalar_lea.vmem (!%p326_p12), [#allocation4], %s1634_s27 }
  0x25   : > { %v1658_v18 = vpack.c.bf16 (!%p326_p12), %v388_v15, %v386_v14  ;;  %v387_v19 = vld [vmem:[%s334_s26 + $0x10] sm:$0xff] (!%p326_p12)  ;;  %v390_v20 = vld [vmem:[%s334_s26 + $0x28] sm:$0xff] (!%p326_p12)  ;;  %v392_v21 = vld [vmem:[%s334_s26 + $0x38] sm:$0xff] (!%p326_p12)  ;;  %s1561_s30 = sshll.u32 (!%p326_p12), %s366_s29, 4  ;;  %s2405_s18 = scalar_lea.hbm (!%p326_p12), %s2458_s9, %s1657_s28  ;;  %s2407_s30 = int_to_ptr.vmem [resolvable:$true] %s1561_s30 }
  0x26   : > { %v1660_v22 = vpack.c.bf16 (!%p326_p12), %v387_v19, %v385_v16  ;;  %v1662_v23 = vpack.c.bf16 (!%p326_p12), %v392_v21, %v390_v20  ;;  %v389_v24 = vld [vmem:[%s334_s26 + $0x20] sm:$0xff] (!%p326_p12)  ;;  %v391_v25 = vld [vmem:[%s334_s26 + $0x30] sm:$0xff] (!%p326_p12)  ;;  %s1547_s22 = scalar_lea.sflag (!%p326_p12), [#allocation5], %s1962_s17  ;;  %s1778_s23 = scalar_lea.vmem (!%p326_p12), %s2407_s30, 32 }
  0x27   : > { %426 = vperm.xlu1 (!%p326_p12), %1777, %v396_v12   ;;  %416 = vperm.xlu0 (!%p326_p12), %1776, %v394_v13   ;;  %v1664_v28 = vpack.c.bf16 (!%p326_p12), %v391_v25, %v389_v24  ;;  %v377_v32 = vld [vmem:[%s2450_s1 + $0x40] sm:$0xff] (!%p326_p12)  ;;  %v402_v33 = vld [vmem:[%s2451_s2 + $0x48] sm:$0xff] (!%p326_p12)  ;;  %v404_v37 = vld [vmem:[%s2451_s2 + $0x58] sm:$0xff] (!%p326_p12)  ;;  %p1779_p13 = scmp.ne.s32.totalorder (!%p326_p12), %s2407_s30, %s1778_s23  ;;  %s1845_s8 = smov (!%p326_p12), [#allocation4]  }
  0x28   : > { %1659 = vmatprep.subr.bf16.mxu0 (!%p326_p12), %v1658_v18  ;;  %1730 = vmatprep.subr.bf16.mxu1 (!%p326_p12), %v1658_v18  ;;  %v401_v34 = vld [vmem:[%s2451_s2 + $0x40] sm:$0xff] (!%p326_p12)  ;;  %v370_v35 = vld [vmem:[%s2450_s1 + $0x8] sm:$0xff] (!%p326_p12)  ;;  %v403_v38 = vld [vmem:[%s2451_s2 + $0x50] sm:$0xff] (!%p326_p12)  ;;  %s1782_s24 = sshll.u32 (!%p326_p12), %s1845_s8, 4  ;;  %s1783_s24 = int_to_ptr.vmem [resolvable:$false] %s1782_s24 }
  0x29   : > { %1661 = vmatpush1.bf16.msra.mxu0 %v1660_v22  ;;  %1732 = vmatpush1.bf16.msra.mxu1 %v1660_v22  ;;  %v378_v36 = vld [vmem:[%s2450_s1 + $0x48] sm:$0xff]  ;;  %v371_v39 = vld [vmem:[%s2450_s1 + $0x10] sm:$0xff]  ;;  %v405_v42 = vld [vmem:[%s2451_s2 + $0x60] sm:$0xff]  ;;  %p1780_p0 = pnand %p1779_p13, %p1937_p6  ;;  %s1784_s25 = scalar_lea.vmem %s1783_s24, 64 }
  0x2a   : > { %1663 = vmatprep.subr.bf16.mxu0 %v1662_v23  ;;  %1731 = vmatprep.subr.bf16.mxu1 %v1662_v23  ;;  %v379_v40 = vld [vmem:[%s2450_s1 + $0x50] sm:$0xff]  ;;  %v406_v41 = vld [vmem:[%s2451_s2 + $0x68] sm:$0xff]  ;;  %v372_v43 = vld [vmem:[%s2450_s1 + $0x18] sm:$0xff]  ;;  %p1785_p2 = scmp.lt.s32.totalorder %s2407_s30, %s1783_s24  ;;  %p1786_p3 = scmp.lt.s32.totalorder %s1784_s25, %s1778_s23 }
  0x2b   : > { %436 = vperm.xlu1 %1777, %v398_v26   ;;  %431 = vperm.xlu0 %1776, %v397_v27   ;;  %v380_v44 = vld [vmem:[%s2450_s1 + $0x58] sm:$0xff]  ;;  %v407_v46 = vld [vmem:[%s2451_s2 + $0x70] sm:$0xff]  ;;  %v373_v47 = vld [vmem:[%s2450_s1 + $0x20] sm:$0xff]  ;;  %p1781_p1 = pneg %p1780_p0 }
  0x2c   : > { %v408_v45 = vld [vmem:[%s2451_s2 + $0x78] sm:$0xff]  ;;  %v381_v48 = vld [vmem:[%s2450_s1 + $0x60] sm:$0xff]  ;;  %v748_v49 = vld [vmem:[%s2453_s4 + $0x8] sm:$0xff]  ;;  %p1787_p4 = por %p1786_p3, %p1785_p2 }
  0x2d   : > { %1665 = vmatpush1.bf16.msra.mxu0 %v1664_v28  ;;  %1733 = vmatpush1.bf16.msra.mxu1 %v1664_v28  ;;  %v747_v50 = vld [vmem:[%s2453_s4] sm:$0xff]  ;;  %v374_v51 = vld [vmem:[%s2450_s1 + $0x28] sm:$0xff]  ;;  %v750_v53 = vld [vmem:[%s2453_s4 + $0x18] sm:$0xff] }
  0x2e   : > { %v382_v52 = vld [vmem:[%s2450_s1 + $0x68] sm:$0xff]  ;;  %v749_v54 = vld [vmem:[%s2453_s4 + $0x10] sm:$0xff]  ;;  %v751_v58 = vld [vmem:[%s2453_s4 + $0x20] sm:$0xff]  ;;  %p1788_p5 = pnand %p1787_p4, %p1781_p1 }
  0x2f   : > { %446 = vperm.xlu1 %1777, %v400_v29   ;;  %441 = vperm.xlu0 %1776, %v399_v30   ;;  %v375_v55 = vld [vmem:[%s2450_s1 + $0x30] sm:$0xff]  ;;  %v752_v57 = vld [vmem:[%s2453_s4 + $0x28] sm:$0xff]  ;;  %v376_v59 = vld [vmem:[%s2450_s1 + $0x38] sm:$0xff] }
  0x30   : > { %1635 = vmatmul.mubr.msk.f32.vlgmr.msra.gmra.mrb[0].mxu0 %vm489_vm0, %v369_v31  ;;  %1643 = vmatmul.mubr.msk.f32.vlgmr.msra.gmra.mrb[0].mxu1 %vm489_vm0, %v377_v32  ;;  %v383_v56 = vld [vmem:[%s2450_s1 + $0x70] sm:$0xff]  ;;  %v384_v60 = vld [vmem:[%s2450_s1 + $0x78] sm:$0xff]  ;;  %v756_v63 = vld [vmem:[%s2453_s4 + $0x48] sm:$0xff] }
  0x31   : > { %608 = vmatprep.mubr.f32.mxu0 %v1843_v17  ;;  %656 = vmatprep.mubr.f32.mxu1 %v1843_v17  ;;  %v754_v61 = vld [vmem:[%s2453_s4 + $0x38] sm:$0xff]  ;;  %v753_v62 = vld [vmem:[%s2453_s4 + $0x30] sm:$0xff]  ;;  %v755_v0 = vld [vmem:[%s2453_s4 + $0x40] sm:$0xff] }
  0x32   : > { %v758_v1 = vld [vmem:[%s2453_s4 + $0x58] sm:$0xff]  ;;  %v757_v2 = vld [vmem:[%s2453_s4 + $0x50] sm:$0xff]  ;;  %v760_v3 = vld [vmem:[%s2453_s4 + $0x68] sm:$0xff] }
  0x33   : > { %456 = vperm.xlu1 %1777, %v402_v33   ;;  %451 = vperm.xlu0 %1776, %v401_v34   ;;  %v759_v4 = vld [vmem:[%s2453_s4 + $0x60] sm:$0xff]  ;;  %v762_v5 = vld [vmem:[%s2453_s4 + $0x78] sm:$0xff]  ;;  %v761_v6 = vld [vmem:[%s2453_s4 + $0x70] sm:$0xff] }
  0x34   : > { %1636 = vmatmul.mubr.msk.f32.gmra.mrb[2].mxu0 %vm489_vm0, %v370_v35  ;;  %1644 = vmatmul.mubr.msk.f32.gmra.mrb[2].mxu1 %vm489_vm0, %v378_v36  ;;  %v1053_v7 = vld [vmem:[%s2455_s6 + $0x8] sm:$0xff]  ;;  %v1052_v8 = vld [vmem:[%s2455_s6] sm:$0xff]  ;;  %v1055_v9 = vld [vmem:[%s2455_s6 + $0x18] sm:$0xff] }
  0x35   : > { %614 = vmatprep.mubr.f32.mxu0 %v1843_v17  ;;  %662 = vmatprep.mubr.f32.mxu1 %v1843_v17  ;;  %v1054_v10 = vld [vmem:[%s2455_s6 + $0x10] sm:$0xff]  ;;  %v1342_v11 = vld [vmem:[%s2456_s7 + $0x8] sm:$0xff]  ;;  %v1341_v12 = vld [vmem:[%s2456_s7] sm:$0xff] }
  0x36   : > { %v1343_v13 = vld [vmem:[%s2456_s7 + $0x10] sm:$0xff]  ;;  %v1056_v14 = vld [vmem:[%s2455_s6 + $0x20] sm:$0xff]  ;;  %v1344_v15 = vld [vmem:[%s2456_s7 + $0x18] sm:$0xff] }
  0x37   : > { %466 = vperm.xlu1 %1777, %v404_v37   ;;  %461 = vperm.xlu0 %1776, %v403_v38   ;;  %v1057_v16 = vld [vmem:[%s2455_s6 + $0x28] sm:$0xff]  ;;  %v1345_v18 = vld [vmem:[%s2456_s7 + $0x20] sm:$0xff]  ;;  %v1058_v19 = vld [vmem:[%s2455_s6 + $0x30] sm:$0xff] }
  0x38   : > { %1637 = vmatmul.mubr.msk.f32.gmra.mrb[4].mxu0 %vm489_vm0, %v371_v39  ;;  %1645 = vmatmul.mubr.msk.f32.gmra.mrb[4].mxu1 %vm489_vm0, %v379_v40  ;;  %v1346_v20 = vld [vmem:[%s2456_s7 + $0x28] sm:$0xff]  ;;  %v1059_v21 = vld [vmem:[%s2455_s6 + $0x38] sm:$0xff]  ;;  %v1347_v22 = vld [vmem:[%s2456_s7 + $0x30] sm:$0xff] }
  0x39   : > { %620 = vmatprep.mubr.f32.mxu0 %v1843_v17  ;;  %668 = vmatprep.mubr.f32.mxu1 %v1843_v17  ;;  %v1060_v23 = vld [vmem:[%s2455_s6 + $0x40] sm:$0xff]  ;;  %v1348_v24 = vld [vmem:[%s2456_s7 + $0x38] sm:$0xff]  ;;  %v1061_v25 = vld [vmem:[%s2455_s6 + $0x48] sm:$0xff] }
  0x3a   : > { %v1349_v26 = vld [vmem:[%s2456_s7 + $0x40] sm:$0xff]  ;;  %v1062_v27 = vld [vmem:[%s2455_s6 + $0x50] sm:$0xff]  ;;  %v1350_v28 = vld [vmem:[%s2456_s7 + $0x48] sm:$0xff] }
  0x3b   : > { %476 = vperm.xlu1 %1777, %v406_v41   ;;  %471 = vperm.xlu0 %1776, %v405_v42   ;;  %v1063_v29 = vld [vmem:[%s2455_s6 + $0x58] sm:$0xff]  ;;  %v1351_v30 = vld [vmem:[%s2456_s7 + $0x50] sm:$0xff]  ;;  %v1064_v31 = vld [vmem:[%s2455_s6 + $0x60] sm:$0xff] }
  0x3c   : > { %1638 = vmatmul.mubr.msk.f32.gmra.mrb[6].mxu0 %vm489_vm0, %v372_v43  ;;  %1646 = vmatmul.mubr.msk.f32.gmra.mrb[6].mxu1 %vm489_vm0, %v380_v44  ;;  %v1352_v32 = vld [vmem:[%s2456_s7 + $0x58] sm:$0xff]  ;;  %v1065_v33 = vld [vmem:[%s2455_s6 + $0x68] sm:$0xff]  ;;  %v1353_v34 = vld [vmem:[%s2456_s7 + $0x60] sm:$0xff] }
  0x3d   : > { %626 = vmatprep.mubr.f32.mxu0 %v1843_v17  ;;  %674 = vmatprep.mubr.f32.mxu1 %v1843_v17  ;;  %v1066_v35 = vld [vmem:[%s2455_s6 + $0x70] sm:$0xff]  ;;  %v1354_v36 = vld [vmem:[%s2456_s7 + $0x68] sm:$0xff]  ;;  %v1067_v37 = vld [vmem:[%s2455_s6 + $0x78] sm:$0xff] }
  0x3e   : > { %v1356_v38 = vld [vmem:[%s2456_s7 + $0x78] sm:$0xff]  ;;  %v1355_v39 = vld [vmem:[%s2456_s7 + $0x70] sm:$0xff]  ;;  %v1511_v40 = vld [vmem:[#allocation2] sm:$0x1] }
  0x3f   : > { %486 = vperm.xlu1 %1777, %v408_v45   ;;  %481 = vperm.xlu0 %1776, %v407_v46  }
  0x40   : > { %1639 = vmatmul.mubr.msk.f32.gmra.mrb[8].mxu0 %vm489_vm0, %v373_v47  ;;  %1647 = vmatmul.mubr.msk.f32.gmra.mrb[8].mxu1 %vm489_vm0, %v381_v48 }
  0x41   : > { %632 = vmatprep.mubr.f32.mxu0 %v1843_v17  ;;  %680 = vmatprep.mubr.f32.mxu1 %v1843_v17 }
  0x43   : > { %770 = vperm.xlu1 %1777, %v748_v49   ;;  %765 = vperm.xlu0 %1776, %v747_v50  }
  0x44   : > { %1640 = vmatmul.mubr.msk.f32.gmra.mrb[10].mxu0 %vm489_vm0, %v374_v51  ;;  %1648 = vmatmul.mubr.msk.f32.gmra.mrb[10].mxu1 %vm489_vm0, %v382_v52 }
  0x45   : > { %638 = vmatprep.mubr.f32.mxu0 %v1843_v17  ;;  %686 = vmatprep.mubr.f32.mxu1 %v1843_v17 }
  0x47   : > { %780 = vperm.xlu1 %1777, %v750_v53   ;;  %775 = vperm.xlu0 %1776, %v749_v54  }
  0x48   : > { %1641 = vmatmul.mubr.msk.f32.gmra.mrb[12].mxu0 %vm489_vm0, %v375_v55  ;;  %1649 = vmatmul.mubr.msk.f32.gmra.mrb[12].mxu1 %vm489_vm0, %v383_v56 }
  0x49   : > { %644 = vmatprep.mubr.f32.mxu0 %v1843_v17  ;;  %692 = vmatprep.mubr.f32.mxu1 %v1843_v17 }
  0x4b   : > { %790 = vperm.xlu1 %1777, %v752_v57   ;;  %785 = vperm.xlu0 %1776, %v751_v58  }
  0x4c   : > { %1642 = vmatmul.mubr.msk.f32.gmra.mrb[14].mxu0 %vm489_vm0, %v376_v59  ;;  %1650 = vmatmul.mubr.msk.f32.gmra.mrb[14].mxu1 %vm489_vm0, %v384_v60 }
  0x4d   : > { %907 = vmatprep.mubr.f32.mxu1 %v1843_v17  ;;  %1212 = vmatprep.mubr.f32.mxu0 %v1843_v17 }
  0x4f   : > { %800 = vperm.xlu1 %1777, %v754_v61   ;;  %795 = vperm.xlu0 %1776, %v753_v62  }
  0x53   : > { %810 = vperm.xlu1 %1777, %v756_v63   ;;  %805 = vperm.xlu0 %1776, %v755_v0  }
  0x57   : > { %820 = vperm.xlu1 %1777, %v758_v1   ;;  %815 = vperm.xlu0 %1776, %v757_v2  }
  0x5b   : > { %830 = vperm.xlu1 %1777, %v760_v3   ;;  %825 = vperm.xlu0 %1776, %v759_v4  }
  0x5f   : > { %840 = vperm.xlu1 %1777, %v762_v5   ;;  %835 = vperm.xlu0 %1776, %v761_v6  }
  0x63   : > { %1075 = vperm.xlu1 %1777, %v1053_v7   ;;  %1070 = vperm.xlu0 %1776, %v1052_v8  }
  0x67   : > { %1085 = vperm.xlu1 %1777, %v1055_v9   ;;  %1080 = vperm.xlu0 %1776, %v1054_v10  }
  0x6b   : > { %1364 = vperm.xlu1 %1777, %v1342_v11   ;;  %1359 = vperm.xlu0 %1776, %v1341_v12  }
  0x6f   : > { %1369 = vperm.xlu1 %1777, %v1343_v13   ;;  %1090 = vperm.xlu0 %1776, %v1056_v14  }
  0x73   : > { %1374 = vperm.xlu1 %1777, %v1344_v15   ;;  %1095 = vperm.xlu0 %1776, %v1057_v16  }
  0x77   : > { %1379 = vperm.xlu1 %1777, %v1345_v18   ;;  %1100 = vperm.xlu0 %1776, %v1058_v19  }
  0x7b   : > { %1384 = vperm.xlu1 %1777, %v1346_v20   ;;  %1105 = vperm.xlu0 %1776, %v1059_v21  }
  0x7f   : > { %1389 = vperm.xlu1 %1777, %v1347_v22   ;;  %1110 = vperm.xlu0 %1776, %v1060_v23  }
  0x83   : > { %1394 = vperm.xlu1 %1777, %v1348_v24   ;;  %1115 = vperm.xlu0 %1776, %v1061_v25  }
  0x87   : > { %1399 = vperm.xlu1 %1777, %v1349_v26   ;;  %1120 = vperm.xlu0 %1776, %v1062_v27  }
  0x8b   : > { %1404 = vperm.xlu1 %1777, %v1350_v28   ;;  %1125 = vperm.xlu0 %1776, %v1063_v29  }
  0x8f   : > { %1409 = vperm.xlu1 %1777, %v1351_v30   ;;  %1130 = vperm.xlu0 %1776, %v1064_v31  }
  0x93   : > { %1414 = vperm.xlu1 %1777, %v1352_v32   ;;  %1135 = vperm.xlu0 %1776, %v1065_v33  }
  0x97   : > { %1419 = vperm.xlu1 %1777, %v1353_v34   ;;  %1140 = vperm.xlu0 %1776, %v1066_v35  }
  0x9b   : > { %1424 = vperm.xlu1 %1777, %v1354_v36   ;;  %1145 = vperm.xlu0 %1776, %v1067_v37  }
  0x9f   : > { %1434 = vperm.xlu1 %1777, %v1356_v38   ;;  %1429 = vperm.xlu0 %1776, %v1355_v39  }
  0xa2   : > { %v412_v41 = vpop.permute.xlu0 %411  ;;  %v422_v42 = vpop.permute.xlu1 %421 }
  0xa3   : > { %1514 = vperm.xlu0 %1776, %v1511_v40  }
  0xa6   : > { %v417_v43 = vpop.permute.xlu0 %416  ;;  %v427_v44 = vpop.permute.xlu1 %426 }
  0xaa   : > { %v2233_v45 = vpop.permute.xlu0 %431  ;;  %v2235_v46 = vpop.permute.xlu1 %436 }
  0xae   : > { %v2237_v47 = vpop.permute.xlu0 %441  ;;  %v2239_v48 = vpop.permute.xlu1 %446 }
  0xb2   : > { %v452_v49 = vpop.permute.xlu0 %451  ;;  %v457_v56 = vpop.permute.xlu1 %456 }
  0xb6   : > { %v462_v5 = vpop.permute.xlu0 %461  ;;  %v467_v23 = vpop.permute.xlu1 %466 }
 0x103   : > { %v604_v50 = vpop.f32.mrb[0].mxu0  ;;  %v652_v51 = vpop.f32.mrb[0].mxu1 }
 0x104   : > { %v606_v52 = vpop.f32.mrb[1].mxu0  ;;  %v653_v53 = vadd.f32 %v652_v51, %v452_v49  ;;  %v654_v54 = vpop.f32.mrb[1].mxu1  ;;  %v605_v57 = vadd.f32 %v604_v50, %v412_v41 }
 0x105   : > { %v655_v55 = vadd.f32 %v654_v54, %v452_v49  ;;  %v607_v58 = vadd.f32 %v606_v52, %v412_v41 }
 0x106   : > { %v715_v63 = vmax.f32 %v653_v53, 0.0  ;;  %v699_v6 = vmax.f32 %v605_v57, 0.0  ;;  %v472_v53 = vpop.permute.xlu0 %471 }
 0x107   : > { %v610_v59 = vpop.f32.mrb[2].mxu0  ;;  %v658_v60 = vpop.f32.mrb[2].mxu1  ;;  %v716_v3 = vmax.f32 %v655_v55, 0.0  ;;  %v700_v9 = vmax.f32 %v607_v58, 0.0 }
 0x108   : > { %v611_v61 = vadd.f32 %v610_v59, %v417_v43  ;;  %v612_v62 = vpop.f32.mrb[3].mxu0  ;;  %v659_v0 = vadd.f32 %v658_v60, %v457_v56  ;;  %v660_v1 = vpop.f32.mrb[3].mxu1 }
 0x109   : > { %v613_v2 = vadd.f32 %v612_v62, %v417_v43  ;;  %v661_v4 = vadd.f32 %v660_v1, %v457_v56  ;;  %v477_v56 = vpop.permute.xlu1 %476 }
 0x10a   : > { %v701_v7 = vmax.f32 %v611_v61, 0.0  ;;  %v717_v8 = vmax.f32 %v659_v0, 0.0 }
 0x10b   : > { %v702_v10 = vmax.f32 %v613_v2, 0.0  ;;  %v616_v11 = vpop.f32.mrb[4].mxu0  ;;  %v718_v12 = vmax.f32 %v661_v4, 0.0  ;;  %v664_v13 = vpop.f32.mrb[4].mxu1 }
 0x10c   : > { %v1668_v14 = vpack.c.bf16 %v701_v7, %v699_v6  ;;  %v2241_v15 = vpack.c.bf16 %v717_v8, %v715_v63  ;;  %v618_v16 = vpop.f32.mrb[5].mxu0  ;;  %v665_v18 = vadd.f32 %v664_v13, %v462_v5  ;;  %v666_v19 = vpop.f32.mrb[5].mxu1  ;;  %v617_v24 = vadd.f32 %v616_v11, %v422_v42 }
 0x10d   : > { %v1666_v20 = vpack.c.bf16 %v702_v10, %v700_v9  ;;  %v2243_v21 = vpack.c.bf16 %v718_v12, %v716_v3  ;;  %v667_v22 = vadd.f32 %v666_v19, %v462_v5  ;;  %v619_v25 = vadd.f32 %v618_v16, %v422_v42  ;;  %v482_v19 = vpop.permute.xlu0 %481 }
 0x10e   : > { %v719_v28 = vmax.f32 %v665_v18, 0.0  ;;  %v703_v36 = vmax.f32 %v617_v24, 0.0 }
 0x10f   : > { %v622_v26 = vpop.f32.mrb[6].mxu0  ;;  %v670_v27 = vpop.f32.mrb[6].mxu1  ;;  %1667 = vmatprep.subr.bf16.mxu1 %v1666_v20  ;;  %v720_v33 = vmax.f32 %v667_v22, 0.0  ;;  %v704_v39 = vmax.f32 %v619_v25, 0.0 }
 0x110   : > { %v623_v29 = vadd.f32 %v622_v26, %v427_v44  ;;  %v671_v30 = vadd.f32 %v670_v27, %v467_v23  ;;  %v624_v31 = vpop.f32.mrb[7].mxu0  ;;  %v672_v32 = vpop.f32.mrb[7].mxu1  ;;  %1669 = vmatpush1.bf16.msra.mxu1 %v1668_v14 }
 0x111   : > { %v625_v34 = vadd.f32 %v624_v31, %v427_v44  ;;  %v673_v35 = vadd.f32 %v672_v32, %v467_v23  ;;  %v487_v23 = vpop.permute.xlu1 %486 }
 0x112   : > { %v705_v37 = vmax.f32 %v623_v29, 0.0  ;;  %v721_v38 = vmax.f32 %v671_v30, 0.0 }
 0x113   : > { %v706_v40 = vmax.f32 %v625_v34, 0.0  ;;  %v722_v41 = vmax.f32 %v673_v35, 0.0  ;;  %v628_v43 = vpop.f32.mrb[8].mxu0  ;;  %v676_v42 = vpop.f32.mrb[8].mxu1 }
 0x114   : > { %v1672_v49 = vpack.c.bf16 %v705_v37, %v703_v36  ;;  %v2245_v50 = vpack.c.bf16 %v721_v38, %v719_v28  ;;  %v630_v51 = vpop.f32.mrb[9].mxu0  ;;  %v678_v52 = vpop.f32.mrb[9].mxu1  ;;  %v629_v44 = vadd.f32 %v628_v43, %v2233_v45  ;;  %v677_v57 = vadd.f32 %v676_v42, %v472_v53 }
 0x115   : > { %v1670_v54 = vpack.c.bf16 %v706_v40, %v704_v39  ;;  %v2247_v55 = vpack.c.bf16 %v722_v41, %v720_v33  ;;  %v631_v58 = vadd.f32 %v630_v51, %v2233_v45  ;;  %v679_v59 = vadd.f32 %v678_v52, %v472_v53  ;;  %v735_v52 = vld [vmem:[%s2452_s3 + $0x20] sm:$0xff]  ;;  %v736_v53 = vld [vmem:[%s2452_s3 + $0x28] sm:$0xff] }
 0x116   : > { %v707_v4 = vmax.f32 %v629_v44, 0.0  ;;  %v723_v5 = vmax.f32 %v677_v57, 0.0  ;;  %v740_v44 = vld [vmem:[%s2452_s3 + $0x48] sm:$0xff]  ;;  %v741_v57 = vld [vmem:[%s2452_s3 + $0x50] sm:$0xff] }
 0x117   : > { %v634_v60 = vpop.f32.mrb[10].mxu0  ;;  %v682_v61 = vpop.f32.mrb[10].mxu1  ;;  %1671 = vmatprep.subr.bf16.mxu1 %v1670_v54  ;;  %v708_v8 = vmax.f32 %v631_v58, 0.0  ;;  %v724_v9 = vmax.f32 %v679_v59, 0.0  ;;  %v737_v54 = vld [vmem:[%s2452_s3 + $0x30] sm:$0xff]  ;;  %v742_v58 = vld [vmem:[%s2452_s3 + $0x58] sm:$0xff] }
 0x118   : > { %v635_v62 = vadd.f32 %v634_v60, %v2235_v46  ;;  %v683_v63 = vadd.f32 %v682_v61, %v477_v56  ;;  %v636_v0 = vpop.f32.mrb[11].mxu0  ;;  %v684_v1 = vpop.f32.mrb[11].mxu1  ;;  %1673 = vmatpush1.bf16.msra.mxu1 %v1672_v49  ;;  %v743_v59 = vld [vmem:[%s2452_s3 + $0x60] sm:$0xff]  ;;  %v744_v60 = vld [vmem:[%s2452_s3 + $0x68] sm:$0xff]  ;;  %v745_v61 = vld [vmem:[%s2452_s3 + $0x70] sm:$0xff] }
 0x119   : > { %v637_v2 = vadd.f32 %v636_v0, %v2235_v46  ;;  %v685_v3 = vadd.f32 %v684_v1, %v477_v56  ;;  %v739_v56 = vld [vmem:[%s2452_s3 + $0x40] sm:$0xff]  ;;  %v766_v1 = vpop.permute.xlu0 %765 }
 0x11a   : > { %v709_v6 = vmax.f32 %v635_v62, 0.0  ;;  %v725_v7 = vmax.f32 %v683_v63, 0.0  ;;  %v746_v62 = vld [vmem:[%s2452_s3 + $0x78] sm:$0xff] }
 0x11b   : > { %v710_v45 = vmax.f32 %v637_v2, 0.0  ;;  %v726_v10 = vmax.f32 %v685_v3, 0.0  ;;  %v640_v11 = vpop.f32.mrb[12].mxu0  ;;  %v688_v12 = vpop.f32.mrb[12].mxu1 }
 0x11c   : > { %v1676_v13 = vpack.c.bf16 %v709_v6, %v707_v4  ;;  %v1692_v14 = vpack.c.bf16 %v725_v7, %v723_v5  ;;  %v642_v16 = vpop.f32.mrb[13].mxu0  ;;  %v690_v18 = vpop.f32.mrb[13].mxu1  ;;  %v641_v46 = vadd.f32 %v640_v11, %v2237_v47  ;;  %v689_v24 = vadd.f32 %v688_v12, %v482_v19 }
 0x11d   : > { %v1674_v20 = vpack.c.bf16 %v710_v45, %v708_v8  ;;  %v1690_v22 = vpack.c.bf16 %v726_v10, %v724_v9  ;;  %v643_v25 = vadd.f32 %v642_v16, %v2237_v47  ;;  %v691_v26 = vadd.f32 %v690_v18, %v482_v19  ;;  %v771_v3 = vpop.permute.xlu1 %770  ;;  %v776_v16 = vpop.permute.xlu0 %775 }
 0x11e   : > { %v711_v35 = vmax.f32 %v641_v46, 0.0  ;;  %v727_v36 = vmax.f32 %v689_v24, 0.0 }
 0x11f   : > { %v646_v27 = vpop.f32.mrb[14].mxu0  ;;  %v694_v28 = vpop.f32.mrb[14].mxu1  ;;  %1675 = vmatprep.subr.bf16.mxu1 %v1674_v20  ;;  %v712_v39 = vmax.f32 %v643_v25, 0.0  ;;  %v728_v40 = vmax.f32 %v691_v26, 0.0 }
 0x120   : > { %v647_v29 = vadd.f32 %v646_v27, %v2239_v48  ;;  %v695_v30 = vadd.f32 %v694_v28, %v487_v23  ;;  %v648_v31 = vpop.f32.mrb[15].mxu0  ;;  %v696_v32 = vpop.f32.mrb[15].mxu1  ;;  %1677 = vmatpush1.bf16.msra.mxu1 %v1676_v13 }
 0x121   : > { %v649_v33 = vadd.f32 %v648_v31, %v2239_v48  ;;  %v697_v34 = vadd.f32 %v696_v32, %v487_v23  ;;  %v731_v48 = vld [vmem:[%s2452_s3] sm:$0xff]  ;;  %v781_v20 = vpop.permute.xlu1 %780 }
 0x122   : > { %v713_v37 = vmax.f32 %v647_v29, 0.0  ;;  %v729_v38 = vmax.f32 %v695_v30, 0.0 }
 0x123   : > { %v714_v47 = vmax.f32 %v649_v33, 0.0  ;;  %v730_v41 = vmax.f32 %v697_v34, 0.0  ;;  %v786_v33 = vpop.permute.xlu0 %785 }
 0x124   : > { %v1680_v43 = vpack.c.bf16 %v713_v37, %v711_v35  ;;  %v1696_v42 = vpack.c.bf16 %v729_v38, %v727_v36 }
 0x125   : > { %v1678_v49 = vpack.c.bf16 %v714_v47, %v712_v39  ;;  %v1694_v51 = vpack.c.bf16 %v730_v41, %v728_v40  ;;  %v791_v36 = vpop.permute.xlu1 %790 }
 0x127   : > { %1679 = vmatprep.subr.bf16.mxu1 %v1678_v49 }
 0x128   : > { %1681 = vmatpush1.bf16.msra.mxu1 %v1680_v43 }
 0x129   : > { %1683 = vmatprep.subr.bf16.mxu1 %v2243_v21  ;;  %v732_v21 = vld [vmem:[%s2452_s3 + $0x8] sm:$0xff] }
 0x12c   : > { %1685 = vmatpush1.bf16.msra.mxu1 %v2241_v15  ;;  %v733_v15 = vld [vmem:[%s2452_s3 + $0x10] sm:$0xff] }
 0x12d   : > { %1687 = vmatprep.subr.bf16.mxu1 %v2247_v55  ;;  %v738_v55 = vld [vmem:[%s2452_s3 + $0x38] sm:$0xff] }
 0x130   : > { %1689 = vmatpush1.bf16.msra.mxu1 %v2245_v50  ;;  %v734_v50 = vld [vmem:[%s2452_s3 + $0x18] sm:$0xff] }
 0x131   : > { %1691 = vmatprep.subr.bf16.mxu1 %v1690_v22 }
 0x134   : > { %1693 = vmatpush1.bf16.msra.mxu1 %v1692_v14 }
 0x135   : > { %1695 = vmatprep.subr.bf16.mxu1 %v1694_v51 }
 0x138   : > { %1697 = vmatpush1.bf16.msra.mxu1 %v1696_v42 }
 0x13b   : > { %908 = vmatmul.mubr.f32.vlgmr.msra.gmra.mrb[16].mxu1 %v731_v48 }
 0x13c   : > { %913 = vmatprep.mubr.f32.mxu1 %v1843_v17 }
 0x13f   : > { %914 = vmatmul.mubr.f32.gmra.mrb[18].mxu1 %v732_v21 }
 0x140   : > { %919 = vmatprep.mubr.f32.mxu1 %v1843_v17 }
 0x143   : > { %920 = vmatmul.mubr.f32.gmra.mrb[20].mxu1 %v733_v15  ;;  %v796_v15 = vpop.permute.xlu0 %795 }
 0x144   : > { %925 = vmatprep.mubr.f32.mxu1 %v1843_v17 }
 0x147   : > { %926 = vmatmul.mubr.f32.gmra.mrb[22].mxu1 %v734_v50 }
 0x148   : > { %931 = vmatprep.mubr.f32.mxu1 %v1843_v17 }
 0x14b   : > { %932 = vmatmul.mubr.f32.gmra.mrb[24].mxu1 %v735_v52 }
 0x14c   : > { %937 = vmatprep.mubr.f32.mxu1 %v1843_v17 }
 0x14f   : > { %938 = vmatmul.mubr.f32.gmra.mrb[26].mxu1 %v736_v53  ;;  %v801_v53 = vpop.permute.xlu1 %800 }
 0x150   : > { %943 = vmatprep.mubr.f32.mxu1 %v1843_v17 }
 0x153   : > { %944 = vmatmul.mubr.f32.gmra.mrb[28].mxu1 %v737_v54 }
 0x154   : > { %949 = vmatprep.mubr.f32.mxu1 %v1843_v17 }
 0x157   : > { %950 = vmatmul.mubr.f32.gmra.mrb[30].mxu1 %v738_v55 }
 0x158   : > { %955 = vmatprep.mubr.f32.mxu1 %v1843_v17 }
 0x15b   : > { %956 = vmatmul.mubr.f32.gmra.mrb[32].mxu1 %v739_v56 }
 0x15c   : > { %961 = vmatprep.mubr.f32.mxu1 %v1843_v17 }
 0x15f   : > { %962 = vmatmul.mubr.f32.gmra.mrb[34].mxu1 %v740_v44 }
 0x160   : > { %967 = vmatprep.mubr.f32.mxu1 %v1843_v17 }
 0x163   : > { %968 = vmatmul.mubr.f32.gmra.mrb[36].mxu1 %v741_v57 }
 0x164   : > { %973 = vmatprep.mubr.f32.mxu1 %v1843_v17 }
 0x167   : > { %974 = vmatmul.mubr.f32.gmra.mrb[38].mxu1 %v742_v58 }
 0x168   : > { %979 = vmatprep.mubr.f32.mxu1 %v1843_v17 }
 0x16b   : > { %980 = vmatmul.mubr.f32.gmra.mrb[40].mxu1 %v743_v59 }
 0x16c   : > { %985 = vmatprep.mubr.f32.mxu1 %v1843_v17 }
 0x16f   : > { %986 = vmatmul.mubr.f32.gmra.mrb[42].mxu1 %v744_v60 }
 0x170   : > { %991 = vmatprep.mubr.f32.mxu1 %v1843_v17 }
 0x173   : > { %992 = vmatmul.mubr.f32.gmra.mrb[44].mxu1 %v745_v61 }
 0x174   : > { %997 = vmatprep.mubr.f32.mxu1 %v1843_v17 }
 0x177   : > { %998 = vmatmul.mubr.f32.gmra.mrb[46].mxu1 %v746_v62 }
 0x20e   : > { %v909_v63 = vpop.f32.mrb[16].mxu1 }
 0x20f   : > { %v911_v0 = vpop.f32.mrb[17].mxu1  ;;  %v910_v2 = vadd.f32 %v909_v63, %v766_v1 }
 0x210   : > { %v912_v4 = vadd.f32 %v911_v0, %v766_v1  ;;  %v806_v1 = vpop.permute.xlu0 %805 }
 0x211   : > { %v1004_v9 = vmax.f32 %v910_v2, 0.0 }
 0x212   : > { %v915_v5 = vpop.f32.mrb[18].mxu1  ;;  %v1005_v10 = vmax.f32 %v912_v4, 0.0  ;;  %v811_v4 = vpop.permute.xlu1 %810 }
 0x213   : > { %v916_v6 = vadd.f32 %v915_v5, %v771_v3  ;;  %v917_v7 = vpop.f32.mrb[19].mxu1 }
 0x214   : > { %v918_v8 = vadd.f32 %v917_v7, %v771_v3 }
 0x215   : > { %v1006_v45 = vmax.f32 %v916_v6, 0.0 }
 0x216   : > { %v1007_v11 = vmax.f32 %v918_v8, 0.0  ;;  %v921_v12 = vpop.f32.mrb[20].mxu1 }
 0x217   : > { %v1700_v13 = vpack.c.bf16 %v1006_v45, %v1004_v9  ;;  %v923_v14 = vpop.f32.mrb[21].mxu1  ;;  %v922_v19 = vadd.f32 %v921_v12, %v776_v16 }
 0x218   : > { %v1698_v18 = vpack.c.bf16 %v1007_v11, %v1005_v10  ;;  %v924_v22 = vadd.f32 %v923_v14, %v776_v16 }
 0x219   : > { %v1008_v26 = vmax.f32 %v922_v19, 0.0 }
 0x21a   : > { %v927_v23 = vpop.f32.mrb[22].mxu1  ;;  %1699 = vmatprep.subr.bf16.mxu0 %v1698_v18  ;;  %v1009_v28 = vmax.f32 %v924_v22, 0.0  ;;  %v816_v18 = vpop.permute.xlu0 %815 }
 0x21b   : > { %v928_v46 = vadd.f32 %v927_v23, %v781_v20  ;;  %v929_v24 = vpop.f32.mrb[23].mxu1  ;;  %1701 = vmatpush1.bf16.msra.mxu0 %v1700_v13  ;;  %v821_v22 = vpop.permute.xlu1 %820 }
 0x21c   : > { %v930_v25 = vadd.f32 %v929_v24, %v781_v20 }
 0x21d   : > { %v1010_v27 = vmax.f32 %v928_v46, 0.0 }
 0x21e   : > { %v1011_v29 = vmax.f32 %v930_v25, 0.0  ;;  %v933_v30 = vpop.f32.mrb[24].mxu1 }
 0x21f   : > { %v1704_v31 = vpack.c.bf16 %v1010_v27, %v1008_v26  ;;  %v935_v32 = vpop.f32.mrb[25].mxu1  ;;  %v934_v35 = vadd.f32 %v933_v30, %v786_v33 }
 0x220   : > { %v1702_v34 = vpack.c.bf16 %v1011_v29, %v1009_v28  ;;  %v936_v37 = vadd.f32 %v935_v32, %v786_v33 }
 0x221   : > { %v1012_v41 = vmax.f32 %v934_v35, 0.0 }
 0x222   : > { %v939_v38 = vpop.f32.mrb[26].mxu1  ;;  %1703 = vmatprep.subr.bf16.mxu0 %v1702_v34  ;;  %v1013_v42 = vmax.f32 %v936_v37, 0.0  ;;  %v826_v34 = vpop.permute.xlu0 %825 }
 0x223   : > { %v940_v39 = vadd.f32 %v939_v38, %v791_v36  ;;  %v941_v40 = vpop.f32.mrb[27].mxu1  ;;  %1705 = vmatpush1.bf16.msra.mxu0 %v1704_v31  ;;  %v831_v37 = vpop.permute.xlu1 %830 }
 0x224   : > { %v942_v47 = vadd.f32 %v941_v40, %v791_v36 }
 0x225   : > { %v1014_v43 = vmax.f32 %v940_v39, 0.0 }
 0x226   : > { %v1015_v49 = vmax.f32 %v942_v47, 0.0  ;;  %v945_v51 = vpop.f32.mrb[28].mxu1 }
 0x227   : > { %v1708_v48 = vpack.c.bf16 %v1014_v43, %v1012_v41  ;;  %v947_v21 = vpop.f32.mrb[29].mxu1  ;;  %v946_v52 = vadd.f32 %v945_v51, %v796_v15 }
 0x228   : > { %v1706_v50 = vpack.c.bf16 %v1015_v49, %v1013_v42  ;;  %v948_v54 = vadd.f32 %v947_v21, %v796_v15 }
 0x229   : > { %v1016_v58 = vmax.f32 %v946_v52, 0.0 }
 0x22a   : > { %v951_v55 = vpop.f32.mrb[30].mxu1  ;;  %1707 = vmatprep.subr.bf16.mxu0 %v1706_v50  ;;  %v1017_v60 = vmax.f32 %v948_v54, 0.0  ;;  %v836_v50 = vpop.permute.xlu0 %835 }
 0x22b   : > { %v952_v56 = vadd.f32 %v951_v55, %v801_v53  ;;  %v953_v44 = vpop.f32.mrb[31].mxu1  ;;  %1709 = vmatpush1.bf16.msra.mxu0 %v1708_v48  ;;  %v841_v54 = vpop.permute.xlu1 %840 }
 0x22c   : > { %v954_v57 = vadd.f32 %v953_v44, %v801_v53 }
 0x22d   : > { %v1018_v59 = vmax.f32 %v952_v56, 0.0 }
 0x22e   : > { %v1019_v61 = vmax.f32 %v954_v57, 0.0  ;;  %v957_v62 = vpop.f32.mrb[32].mxu1 }
 0x22f   : > { %v1712_v63 = vpack.c.bf16 %v1018_v59, %v1016_v58  ;;  %v959_v0 = vpop.f32.mrb[33].mxu1  ;;  %v958_v3 = vadd.f32 %v957_v62, %v806_v1 }
 0x230   : > { %v1710_v2 = vpack.c.bf16 %v1019_v61, %v1017_v60  ;;  %v960_v5 = vadd.f32 %v959_v0, %v806_v1  ;;  %v1036_v1 = vld [vmem:[%s2454_s5] sm:$0xff] }
 0x231   : > { %v1020_v45 = vmax.f32 %v958_v3, 0.0  ;;  %v1038_v3 = vld [vmem:[%s2454_s5 + $0x10] sm:$0xff] }
 0x232   : > { %v963_v6 = vpop.f32.mrb[34].mxu1  ;;  %1711 = vmatprep.subr.bf16.mxu0 %v1710_v2  ;;  %v1021_v11 = vmax.f32 %v960_v5, 0.0  ;;  %v1037_v2 = vld [vmem:[%s2454_s5 + $0x8] sm:$0xff]  ;;  %v1040_v5 = vld [vmem:[%s2454_s5 + $0x20] sm:$0xff] }
 0x233   : > { %v964_v7 = vadd.f32 %v963_v6, %v811_v4  ;;  %v965_v8 = vpop.f32.mrb[35].mxu1  ;;  %1713 = vmatpush1.bf16.msra.mxu0 %v1712_v63  ;;  %v1041_v6 = vld [vmem:[%s2454_s5 + $0x28] sm:$0xff] }
 0x234   : > { %v966_v9 = vadd.f32 %v965_v8, %v811_v4  ;;  %v1039_v4 = vld [vmem:[%s2454_s5 + $0x18] sm:$0xff] }
 0x235   : > { %v1022_v10 = vmax.f32 %v964_v7, 0.0  ;;  %v1042_v7 = vld [vmem:[%s2454_s5 + $0x30] sm:$0xff]  ;;  %v1043_v8 = vld [vmem:[%s2454_s5 + $0x38] sm:$0xff] }
 0x236   : > { %v1023_v12 = vmax.f32 %v966_v9, 0.0  ;;  %v969_v13 = vpop.f32.mrb[36].mxu1  ;;  %v1044_v9 = vld [vmem:[%s2454_s5 + $0x40] sm:$0xff] }
 0x237   : > { %v1716_v14 = vpack.c.bf16 %v1022_v10, %v1020_v45  ;;  %v971_v16 = vpop.f32.mrb[37].mxu1  ;;  %v970_v20 = vadd.f32 %v969_v13, %v816_v18  ;;  %v1045_v45 = vld [vmem:[%s2454_s5 + $0x48] sm:$0xff]  ;;  %v1046_v10 = vld [vmem:[%s2454_s5 + $0x50] sm:$0xff] }
 0x238   : > { %v1714_v19 = vpack.c.bf16 %v1023_v12, %v1021_v11  ;;  %v972_v23 = vadd.f32 %v971_v16, %v816_v18  ;;  %v1047_v11 = vld [vmem:[%s2454_s5 + $0x58] sm:$0xff]  ;;  %v1048_v12 = vld [vmem:[%s2454_s5 + $0x60] sm:$0xff]  ;;  %v1049_v13 = vld [vmem:[%s2454_s5 + $0x68] sm:$0xff]  ;;  %v1071_v18 = vpop.permute.xlu0 %1070 }
 0x239   : > { %v1024_v27 = vmax.f32 %v970_v20, 0.0  ;;  %v1051_v16 = vld [vmem:[%s2454_s5 + $0x78] sm:$0xff] }
 0x23a   : > { %v975_v46 = vpop.f32.mrb[38].mxu1  ;;  %1715 = vmatprep.subr.bf16.mxu0 %v1714_v19  ;;  %v1025_v29 = vmax.f32 %v972_v23, 0.0  ;;  %v1076_v19 = vpop.permute.xlu1 %1075 }
 0x23b   : > { %v976_v24 = vadd.f32 %v975_v46, %v821_v22  ;;  %v977_v25 = vpop.f32.mrb[39].mxu1  ;;  %1717 = vmatpush1.bf16.msra.mxu0 %v1716_v14  ;;  %v1050_v14 = vld [vmem:[%s2454_s5 + $0x70] sm:$0xff] }
 0x23c   : > { %v978_v26 = vadd.f32 %v977_v25, %v821_v22  ;;  %v1081_v20 = vpop.permute.xlu0 %1080 }
 0x23d   : > { %v1026_v28 = vmax.f32 %v976_v24, 0.0 }
 0x23e   : > { %v1027_v30 = vmax.f32 %v978_v26, 0.0  ;;  %v981_v31 = vpop.f32.mrb[40].mxu1  ;;  %v1086_v22 = vpop.permute.xlu1 %1085 }
 0x23f   : > { %v1720_v32 = vpack.c.bf16 %v1026_v28, %v1024_v27  ;;  %v983_v33 = vpop.f32.mrb[41].mxu1  ;;  %v982_v36 = vadd.f32 %v981_v31, %v826_v34 }
 0x240   : > { %v1718_v35 = vpack.c.bf16 %v1027_v30, %v1025_v29  ;;  %v984_v38 = vadd.f32 %v983_v33, %v826_v34  ;;  %v1360_v23 = vpop.permute.xlu0 %1359 }
 0x241   : > { %v1028_v43 = vmax.f32 %v982_v36, 0.0 }
 0x242   : > { %v987_v39 = vpop.f32.mrb[42].mxu1  ;;  %1719 = vmatprep.subr.bf16.mxu0 %v1718_v35  ;;  %v1029_v49 = vmax.f32 %v984_v38, 0.0  ;;  %v1365_v46 = vpop.permute.xlu1 %1364 }
 0x243   : > { %v988_v40 = vadd.f32 %v987_v39, %v831_v37  ;;  %v989_v47 = vpop.f32.mrb[43].mxu1  ;;  %1721 = vmatpush1.bf16.msra.mxu0 %v1720_v32 }
 0x244   : > { %v990_v41 = vadd.f32 %v989_v47, %v831_v37  ;;  %v1091_v24 = vpop.permute.xlu0 %1090 }
 0x245   : > { %v1030_v42 = vmax.f32 %v988_v40, 0.0 }
 0x246   : > { %v1031_v51 = vmax.f32 %v990_v41, 0.0  ;;  %v993_v48 = vpop.f32.mrb[44].mxu1  ;;  %v1370_v25 = vpop.permute.xlu1 %1369 }
 0x247   : > { %v1724_v21 = vpack.c.bf16 %v1030_v42, %v1028_v43  ;;  %v995_v15 = vpop.f32.mrb[45].mxu1  ;;  %v994_v53 = vadd.f32 %v993_v48, %v836_v50 }
 0x248   : > { %v1722_v52 = vpack.c.bf16 %v1031_v51, %v1029_v49  ;;  %v996_v55 = vadd.f32 %v995_v15, %v836_v50  ;;  %v1096_v26 = vpop.permute.xlu0 %1095 }
 0x249   : > { %v1032_v59 = vmax.f32 %v994_v53, 0.0 }
 0x24a   : > { %v999_v56 = vpop.f32.mrb[46].mxu1  ;;  %1723 = vmatprep.subr.bf16.mxu0 %v1722_v52  ;;  %v1033_v61 = vmax.f32 %v996_v55, 0.0  ;;  %v1375_v27 = vpop.permute.xlu1 %1374 }
 0x24b   : > { %v1000_v44 = vadd.f32 %v999_v56, %v841_v54  ;;  %v1001_v57 = vpop.f32.mrb[47].mxu1  ;;  %1725 = vmatpush1.bf16.msra.mxu0 %v1724_v21 }
 0x24c   : > { %v1002_v58 = vadd.f32 %v1001_v57, %v841_v54  ;;  %v2387_v28 = vpop.permute.xlu0 %1100 }
 0x24d   : > { %v1034_v60 = vmax.f32 %v1000_v44, 0.0 }
 0x24e   : > { %v1035_v62 = vmax.f32 %v1002_v58, 0.0  ;;  %v1380_v31 = vpop.permute.xlu1 %1379 }
 0x24f   : > { %v1728_v63 = vpack.c.bf16 %v1034_v60, %v1032_v59 }
 0x250   : > { %v1726_v0 = vpack.c.bf16 %v1035_v62, %v1033_v61  ;;  %v2389_v37 = vpop.permute.xlu0 %1105 }
 0x252   : > { %1727 = vmatprep.subr.bf16.mxu0 %v1726_v0  ;;  %v1385_v47 = vpop.permute.xlu1 %1384 }
 0x253   : > { %1729 = vmatpush1.bf16.msra.mxu0 %v1728_v63 }
 0x254   : > { %v2391_v54 = vpop.permute.xlu0 %1110 }
 0x256   : > { %1213 = vmatmul.mubr.f32.vlgmr.msra.gmra.mrb[16].mxu0 %v1036_v1  ;;  %v1390_v60 = vpop.permute.xlu1 %1389 }
 0x257   : > { %1218 = vmatprep.mubr.f32.mxu0 %v1843_v17 }
 0x25a   : > { %1219 = vmatmul.mubr.f32.gmra.mrb[18].mxu0 %v1037_v2 }
 0x25b   : > { %1224 = vmatprep.mubr.f32.mxu0 %v1843_v17 }
 0x25e   : > { %1225 = vmatmul.mubr.f32.gmra.mrb[20].mxu0 %v1038_v3 }
 0x25f   : > { %1230 = vmatprep.mubr.f32.mxu0 %v1843_v17 }
 0x262   : > { %1231 = vmatmul.mubr.f32.gmra.mrb[22].mxu0 %v1039_v4 }
 0x263   : > { %1236 = vmatprep.mubr.f32.mxu0 %v1843_v17 }
 0x266   : > { %1237 = vmatmul.mubr.f32.gmra.mrb[24].mxu0 %v1040_v5 }
 0x267   : > { %1242 = vmatprep.mubr.f32.mxu0 %v1843_v17 }
 0x26a   : > { %1243 = vmatmul.mubr.f32.gmra.mrb[26].mxu0 %v1041_v6 }
 0x26b   : > { %1248 = vmatprep.mubr.f32.mxu0 %v1843_v17 }
 0x26e   : > { %1249 = vmatmul.mubr.f32.gmra.mrb[28].mxu0 %v1042_v7  ;;  %v1116_v7 = vpop.permute.xlu0 %1115 }
 0x26f   : > { %1254 = vmatprep.mubr.f32.mxu0 %v1843_v17 }
 0x272   : > { %1255 = vmatmul.mubr.f32.gmra.mrb[30].mxu0 %v1043_v8 }
 0x273   : > { %1260 = vmatprep.mubr.f32.mxu0 %v1843_v17 }
 0x276   : > { %1261 = vmatmul.mubr.f32.gmra.mrb[32].mxu0 %v1044_v9 }
 0x277   : > { %1266 = vmatprep.mubr.f32.mxu0 %v1843_v17 }
 0x27a   : > { %1267 = vmatmul.mubr.f32.gmra.mrb[34].mxu0 %v1045_v45 }
 0x27b   : > { %1272 = vmatprep.mubr.f32.mxu0 %v1843_v17 }
 0x27e   : > { %1273 = vmatmul.mubr.f32.gmra.mrb[36].mxu0 %v1046_v10 }
 0x27f   : > { %1278 = vmatprep.mubr.f32.mxu0 %v1843_v17 }
 0x282   : > { %1279 = vmatmul.mubr.f32.gmra.mrb[38].mxu0 %v1047_v11  ;;  %v1395_v11 = vpop.permute.xlu1 %1394 }
 0x283   : > { %1284 = vmatprep.mubr.f32.mxu0 %v1843_v17 }
 0x286   : > { %1285 = vmatmul.mubr.f32.gmra.mrb[40].mxu0 %v1048_v12 }
 0x287   : > { %1290 = vmatprep.mubr.f32.mxu0 %v1843_v17 }
 0x28a   : > { %1291 = vmatmul.mubr.f32.gmra.mrb[42].mxu0 %v1049_v13 }
 0x28b   : > { %1296 = vmatprep.mubr.f32.mxu0 %v1843_v17 }
 0x28e   : > { %1297 = vmatmul.mubr.f32.gmra.mrb[44].mxu0 %v1050_v14 }
 0x28f   : > { %1302 = vmatprep.mubr.f32.mxu0 %v1843_v17 }
 0x292   : > { %1303 = vmatmul.mubr.f32.gmra.mrb[46].mxu0 %v1051_v16 }
 0x329   : > { %v1214_v29 = vpop.f32.mrb[16].mxu0 }
 0x32a   : > { %v1215_v30 = vadd.f32 %v1214_v29, %v1071_v18  ;;  %v1216_v17 = vpop.f32.mrb[17].mxu0 }
 0x32b   : > { %v1217_v32 = vadd.f32 %v1216_v17, %v1071_v18 }
 0x32c   : > { %v1309_v34 = vmax.f32 %v1215_v30, 0.0 }
 0x32d   : > { %v1220_v33 = vpop.f32.mrb[18].mxu0  ;;  %v1310_v38 = vmax.f32 %v1217_v32, 0.0 }
 0x32e   : > { %v1221_v35 = vadd.f32 %v1220_v33, %v1076_v19  ;;  %v1222_v36 = vpop.f32.mrb[19].mxu0  ;;  %v1437_v42 = vmul.f32 %v1360_v23, %v1309_v34  ;;  %v1400_v33 = vpop.permute.xlu1 %1399 }
 0x32f   : > { %v1223_v39 = vadd.f32 %v1222_v36, %v1076_v19  ;;  %v1438_v21 = vmul.f32 %v1360_v23, %v1310_v38 }
 0x330   : > { %v1311_v40 = vmax.f32 %v1221_v35, 0.0 }
 0x331   : > { %v1312_v41 = vmax.f32 %v1223_v39, 0.0  ;;  %v1226_v43 = vpop.f32.mrb[20].mxu0 }
 0x332   : > { %v1439_v49 = vmul.f32 %v1365_v46, %v1311_v40  ;;  %v1227_v51 = vadd.f32 %v1226_v43, %v1081_v20  ;;  %v1228_v48 = vpop.f32.mrb[21].mxu0 }
 0x333   : > { %v1440_v15 = vmul.f32 %v1365_v46, %v1312_v41  ;;  %v1229_v50 = vadd.f32 %v1228_v48, %v1081_v20 }
 0x334   : > { %v1469_v52 = vadd.f32 %v1439_v49, %v1437_v42  ;;  %v1313_v53 = vmax.f32 %v1227_v51, 0.0 }
 0x335   : > { %v1490_v55 = vadd.f32 %v1440_v15, %v1438_v21  ;;  %v1314_v56 = vmax.f32 %v1229_v50, 0.0  ;;  %v1232_v44 = vpop.f32.mrb[22].mxu0  ;;  %v1405_v15 = vpop.permute.xlu1 %1404 }
 0x336   : > { %v1441_v57 = vmul.f32 %v1370_v25, %v1313_v53  ;;  %v1233_v58 = vadd.f32 %v1232_v44, %v1086_v22  ;;  %v1234_v59 = vpop.f32.mrb[23].mxu0 }
 0x337   : > { %v1442_v61 = vmul.f32 %v1370_v25, %v1314_v56  ;;  %v1235_v62 = vadd.f32 %v1234_v59, %v1086_v22  ;;  %v1121_v25 = vpop.permute.xlu0 %1120 }
 0x338   : > { %v1470_v63 = vadd.f32 %v1469_v52, %v1441_v57  ;;  %v1315_v0 = vmax.f32 %v1233_v58, 0.0 }
 0x339   : > { %v1491_v1 = vadd.f32 %v1490_v55, %v1442_v61  ;;  %v1316_v2 = vmax.f32 %v1235_v62, 0.0  ;;  %v1238_v3 = vpop.f32.mrb[24].mxu0 }
 0x33a   : > { %v1443_v4 = vmul.f32 %v1375_v27, %v1315_v0  ;;  %v1239_v5 = vadd.f32 %v1238_v3, %v1091_v24  ;;  %v1240_v6 = vpop.f32.mrb[25].mxu0 }
 0x33b   : > { %v1444_v8 = vmul.f32 %v1375_v27, %v1316_v2  ;;  %v1241_v9 = vadd.f32 %v1240_v6, %v1091_v24  ;;  %v1126_v42 = vpop.permute.xlu0 %1125 }
 0x33c   : > { %v1471_v45 = vadd.f32 %v1470_v63, %v1443_v4  ;;  %v1317_v10 = vmax.f32 %v1239_v5, 0.0 }
 0x33d   : > { %v1492_v12 = vadd.f32 %v1491_v1, %v1444_v8  ;;  %v1318_v13 = vmax.f32 %v1241_v9, 0.0  ;;  %v1244_v14 = vpop.f32.mrb[26].mxu0  ;;  %v1410_v1 = vpop.permute.xlu1 %1409 }
 0x33e   : > { %v1445_v16 = vmul.f32 %v1380_v31, %v1317_v10  ;;  %v1245_v18 = vadd.f32 %v1244_v14, %v1096_v26  ;;  %v1246_v19 = vpop.f32.mrb[27].mxu0 }
 0x33f   : > { %v1446_v20 = vmul.f32 %v1380_v31, %v1318_v13  ;;  %v1247_v22 = vadd.f32 %v1246_v19, %v1096_v26  ;;  %v1131_v59 = vpop.permute.xlu0 %1130 }
 0x340   : > { %v1472_v23 = vadd.f32 %v1471_v45, %v1445_v16  ;;  %v1319_v46 = vmax.f32 %v1245_v18, 0.0 }
 0x341   : > { %v1493_v29 = vadd.f32 %v1492_v12, %v1446_v20  ;;  %v1320_v30 = vmax.f32 %v1247_v22, 0.0  ;;  %v1250_v17 = vpop.f32.mrb[28].mxu0  ;;  %v1415_v18 = vpop.permute.xlu1 %1414 }
 0x342   : > { %v1447_v32 = vmul.f32 %v1385_v47, %v1319_v46  ;;  %v1251_v24 = vadd.f32 %v1250_v17, %v2387_v28  ;;  %v1252_v27 = vpop.f32.mrb[29].mxu0 }
 0x343   : > { %v1448_v34 = vmul.f32 %v1385_v47, %v1320_v30  ;;  %v1253_v35 = vadd.f32 %v1252_v27, %v2387_v28 }
 0x344   : > { %v1473_v36 = vadd.f32 %v1472_v23, %v1447_v32  ;;  %v1321_v38 = vmax.f32 %v1251_v24, 0.0 }
 0x345   : > { %v1494_v39 = vadd.f32 %v1493_v29, %v1448_v34  ;;  %v1322_v40 = vmax.f32 %v1253_v35, 0.0  ;;  %v1256_v31 = vpop.f32.mrb[30].mxu0 }
 0x346   : > { %v1449_v26 = vmul.f32 %v1390_v60, %v1321_v38  ;;  %v1257_v41 = vadd.f32 %v1256_v31, %v2389_v37  ;;  %v1258_v43 = vpop.f32.mrb[31].mxu0  ;;  %v1420_v38 = vpop.permute.xlu1 %1419 }
 0x347   : > { %v1450_v49 = vmul.f32 %v1390_v60, %v1322_v40  ;;  %v1259_v51 = vadd.f32 %v1258_v43, %v2389_v37 }
 0x348   : > { %v1474_v48 = vadd.f32 %v1473_v36, %v1449_v26  ;;  %v1323_v21 = vmax.f32 %v1257_v41, 0.0 }
 0x349   : > { %v1495_v50 = vadd.f32 %v1494_v39, %v1450_v49  ;;  %v1324_v47 = vmax.f32 %v1259_v51, 0.0  ;;  %v1262_v52 = vpop.f32.mrb[32].mxu0 }
 0x34a   : > { %v1451_v28 = vmul.f32 %v1395_v11, %v1323_v21  ;;  %v1263_v53 = vadd.f32 %v1262_v52, %v2391_v54  ;;  %v1264_v55 = vpop.f32.mrb[33].mxu0 }
 0x34b   : > { %v1452_v56 = vmul.f32 %v1395_v11, %v1324_v47  ;;  %v1265_v44 = vadd.f32 %v1264_v55, %v2391_v54  ;;  %v1136_v11 = vpop.permute.xlu0 %1135 }
 0x34c   : > { %v1475_v57 = vadd.f32 %v1474_v48, %v1451_v28  ;;  %v1325_v58 = vmax.f32 %v1263_v53, 0.0  ;;  %v1425_v28 = vpop.permute.xlu1 %1424 }
 0x34d   : > { %v1496_v61 = vadd.f32 %v1495_v50, %v1452_v56  ;;  %v1326_v60 = vmax.f32 %v1265_v44, 0.0  ;;  %v1268_v62 = vpop.f32.mrb[34].mxu0 }
 0x34e   : > { %v1453_v37 = vmul.f32 %v1400_v33, %v1325_v58  ;;  %v1269_v63 = vadd.f32 %v1268_v62, %v1116_v7  ;;  %v1270_v0 = vpop.f32.mrb[35].mxu0 }
 0x34f   : > { %v1454_v2 = vmul.f32 %v1400_v33, %v1326_v60  ;;  %v1271_v3 = vadd.f32 %v1270_v0, %v1116_v7  ;;  %v1141_v24 = vpop.permute.xlu0 %1140 }
 0x350   : > { %v1476_v4 = vadd.f32 %v1475_v57, %v1453_v37  ;;  %v1327_v5 = vmax.f32 %v1269_v63, 0.0 }
 0x351   : > { %v1497_v6 = vadd.f32 %v1496_v61, %v1454_v2  ;;  %v1328_v8 = vmax.f32 %v1271_v3, 0.0  ;;  %v1274_v9 = vpop.f32.mrb[36].mxu0 }
 0x352   : > { %v1455_v45 = vmul.f32 %v1405_v15, %v1327_v5  ;;  %v1275_v10 = vadd.f32 %v1274_v9, %v1121_v25  ;;  %v1276_v54 = vpop.f32.mrb[37].mxu0 }
 0x353   : > { %v1456_v12 = vmul.f32 %v1405_v15, %v1328_v8  ;;  %v1277_v13 = vadd.f32 %v1276_v54, %v1121_v25  ;;  %v1146_v21 = vpop.permute.xlu0 %1145 }
 0x354   : > { %v1477_v14 = vadd.f32 %v1476_v4, %v1455_v45  ;;  %v1329_v16 = vmax.f32 %v1275_v10, 0.0  ;;  %v1435_v45 = vpop.permute.xlu1 %1434 }
 0x355   : > { %v1498_v19 = vadd.f32 %v1497_v6, %v1456_v12  ;;  %v1330_v20 = vmax.f32 %v1277_v13, 0.0  ;;  %v1280_v22 = vpop.f32.mrb[38].mxu0  ;;  %v1517_v13 = vlaneseq }
 0x356   : > { %v1457_v23 = vmul.f32 %v1410_v1, %v1329_v16  ;;  %v1281_v46 = vadd.f32 %v1280_v22, %v1126_v42  ;;  %v1282_v7 = vpop.f32.mrb[39].mxu0 }
 0x357   : > { %v1458_v29 = vmul.f32 %v1410_v1, %v1330_v20  ;;  %v1283_v30 = vadd.f32 %v1282_v7, %v1126_v42  ;;  %v1430_v37 = vpop.permute.xlu0 %1429  ;;  %v1518_v20 = vshrl.u32 %v1517_v13, 7  ;;  %v1844_v7 = vmov 1966171168  }
 0x358   : > { %v1478_v17 = vadd.f32 %v1477_v14, %v1457_v23  ;;  %v1331_v32 = vmax.f32 %v1281_v46, 0.0  ;;  %vm1543_vm1 = vcmp.lt.s32.totalorder %v1517_v13, 256 }
 0x359   : > { %v1499_v27 = vadd.f32 %v1498_v19, %v1458_v29  ;;  %v1332_v33 = vmax.f32 %v1283_v30, 0.0  ;;  %v1286_v34 = vpop.f32.mrb[40].mxu0  ;;  %v1527_v29 = vunpack.c.l.s4 %v1844_v7 }
 0x35a   : > { %v1459_v35 = vmul.f32 %v1415_v18, %v1331_v32  ;;  %v1287_v36 = vadd.f32 %v1286_v34, %v1131_v59  ;;  %v1288_v25 = vpop.f32.mrb[41].mxu0 }
 0x35b   : > { %v1460_v39 = vmul.f32 %v1415_v18, %v1332_v33  ;;  %v1289_v40 = vadd.f32 %v1288_v25, %v1131_v59  ;;  %v1528_v34 = vunpack.c.0.s8 %v1527_v29 }
 0x35c   : > { %v1479_v31 = vadd.f32 %v1478_v17, %v1459_v35  ;;  %v1333_v26 = vmax.f32 %v1287_v36, 0.0  ;;  %v1519_v17 = vsub.s32 0, %v1518_v20 }
 0x35d   : > { %v1500_v41 = vadd.f32 %v1499_v27, %v1460_v39  ;;  %v1334_v43 = vmax.f32 %v1289_v40, 0.0  ;;  %v1292_v49 = vpop.f32.mrb[42].mxu0  ;;  %v1531_v40 = vsub.s32 %v1528_v34, %v1518_v20 }
 0x35e   : > { %v1461_v51 = vmul.f32 %v1420_v38, %v1333_v26  ;;  %v1293_v48 = vadd.f32 %v1292_v49, %v1136_v11  ;;  %v1294_v42 = vpop.f32.mrb[43].mxu0 }
 0x35f   : > { %v1462_v15 = vmul.f32 %v1420_v38, %v1334_v43  ;;  %v1295_v50 = vadd.f32 %v1294_v42, %v1136_v11 }
 0x360   : > { %v1480_v47 = vadd.f32 %v1479_v31, %v1461_v51  ;;  %v1335_v52 = vmax.f32 %v1293_v48, 0.0 }
 0x361   : > { %v1501_v53 = vadd.f32 %v1500_v41, %v1462_v15  ;;  %v1336_v55 = vmax.f32 %v1295_v50, 0.0  ;;  %v1298_v56 = vpop.f32.mrb[44].mxu0 }
 0x362   : > { %v1463_v44 = vmul.f32 %v1425_v28, %v1335_v52  ;;  %v1299_v57 = vadd.f32 %v1298_v56, %v1141_v24  ;;  %v1300_v58 = vpop.f32.mrb[45].mxu0 }
 0x363   : > { %v1464_v59 = vmul.f32 %v1425_v28, %v1336_v55  ;;  %v1301_v61 = vadd.f32 %v1300_v58, %v1141_v24  ;;  %v1515_v24 = vpop.permute.xlu0 %1514 }
 0x364   : > { %v1481_v60 = vadd.f32 %v1480_v47, %v1463_v44  ;;  %v1337_v62 = vmax.f32 %v1299_v57, 0.0  ;;  %v1520_v36 = vrot.slane %v1515_v24, %v1519_v17 }
 0x365   : > { %v1502_v63 = vadd.f32 %v1501_v53, %v1464_v59  ;;  %v1338_v0 = vmax.f32 %v1301_v61, 0.0  ;;  %v1304_v1 = vpop.f32.mrb[46].mxu0 }
 0x366   : > { %v1465_v2 = vmul.f32 %v1430_v37, %v1337_v62  ;;  %v1305_v3 = vadd.f32 %v1304_v1, %v1146_v21  ;;  %v1306_v4 = vpop.f32.mrb[47].mxu0 }
 0x367   : > { %v1466_v5 = vmul.f32 %v1430_v37, %v1338_v0  ;;  %v1307_v6 = vadd.f32 %v1306_v4, %v1146_v21 }
 0x368   : > { %v1482_v8 = vadd.f32 %v1481_v60, %v1465_v2  ;;  %v1339_v9 = vmax.f32 %v1305_v3, 0.0 }
 0x369   : > { %v1503_v10 = vadd.f32 %v1502_v63, %v1466_v5  ;;  %v1340_v54 = vmax.f32 %v1307_v6, 0.0 }
 0x36a   : > { %v1467_v11 = vmul.f32 %v1435_v45, %v1339_v9 }
 0x36b   : > { %v1468_v12 = vmul.f32 %v1435_v45, %v1340_v54 }
 0x36c   : > { %v1483_v14 = vadd.f32 %v1482_v8, %v1467_v11 }
 0x36d   : > { %v1504_v16 = vadd.f32 %v1503_v10, %v1468_v12 }
 0x36e   : > { %v1484_v18 = vrot.slane %v1483_v14, 4 }
 0x36f   : > { %v1505_v19 = vrot.slane %v1504_v16, 4 }
 0x370   : > { %v1485_v22 = vadd.f32 %v1484_v18, %v1483_v14 }
 0x371   : > { %v1506_v23 = vadd.f32 %v1505_v19, %v1504_v16 }
 0x372   : > { %v1486_v46 = vrot.slane %v1485_v22, 2 }
 0x373   : > { %v1507_v30 = vrot.slane %v1506_v23, 2 }
 0x374   : > { %v1487_v32 = vadd.f32 %v1486_v46, %v1485_v22 }
 0x375   : > { %v1508_v27 = vadd.f32 %v1507_v30, %v1506_v23 }
 0x376   : > { %v1488_v33 = vrot.slane %v1487_v32, 1 }
 0x377   : > { %v1509_v35 = vrot.slane %v1508_v27, 1 }
 0x378   : > { %v1489_v25 = vadd.f32 %v1488_v33, %v1487_v32 }
 0x379   : > { %v1510_v38 = vadd.f32 %v1509_v35, %v1508_v27 }
 0x37a   : > { %v1521_v39 = vadd.f32 %v1520_v36, %v1489_v25 }
 0x37b   : > { %v1522_v31 = vadd.f32 %v1520_v36, %v1510_v38 }
 0x37d   : > { %v1525_v26 = vcombine.low %v1521_v39, %v1522_v31 }
 0x37f   : > { %v1532_v41 = vrot.slane %v1525_v26, %v1531_v40 }
 0x381   : > { %v1539_v43 = vrot.slane %v1532_v41, %v1531_v40 }
 0x383   : > { %1545 = vst.msk [vmem:[%s366_s29] sm:$0x3] %vm1543_vm1, %v1539_v43 }
 0x384   : > { %1791 = shalt.err (!%p1788_p5)
}
 0x385   : > { %s1792_s17 = scalar_lea.hbm %s2405_s18, 32  ;;  %s1796_s28 = scalar_lea.hbm %s2458_s9, 64 }
 0x386   : > { %p1793_p7 = scmp.ne.s32.totalorder %s2405_s18, %s1792_s17  ;;  %p1797_p12 = scmp.lt.u32.totalorder %s2405_s18, %s2458_s9 }
 0x387   : > { %p1798_p13 = scmp.lt.u32.totalorder %s1796_s28, %s1792_s17  ;;  %p1800_p1 = scmp.lt.u32.totalorder %s1792_s17, %s2405_s18 }
 0x388   : > { %p1794_p10 = pnand %p1793_p7, %p1937_p6 }
 0x389   : > { %p1799_p0 = por %p1798_p13, %p1797_p12 }
 0x38a   : > { %p1795_p11 = pneg %p1794_p10 }
 0x38b   : > { %p1801_p2 = por %p1800_p1, %p1799_p0 }
 0x38d   : > { %p1802_p3 = pnand %p1801_p2, %p1795_p11 }
 0x38f   : > { %1805 = shalt.err (!%p1802_p3)
}
 0x390   : > { %1734 = dma.vmem_to_hbm [thread:$0]  (%p1937_p6), %s2407_s30, 32, %s2405_s18, %s1547_s22  }
 0x391 PF: > { %s1573_s15 = sand.u32 1, %s1828_s11   ;;  %p1737_p4 = pnand %p1628_p9, %p1941_p8 }
 0x392   : > { %s1574_s23 = scalar_lea.sflag [#allocation5], %s1573_s15 }
 0x393   : > { %1823 = dma.done.wait (!%p1737_p4), %s1574_s23, 32  }
 0x394   : > { %1825 = vsyncadd (!%p1737_p4), %s1574_s23, 4294967264  ;;  %p21_p5 = scmp.ge.s32.totalorder %s1922_s16, 4   ;;  %s2461_s11 = smov %s1832_s12 }
 0x395   : > { %s2462_s12 = smov %s1836_s13  ;;  %s2463_s13 = smov %s1935_s19 }
 0x396   : > { %s2464_s14 = smov %s1922_s16  ;;  %23 = sbr.rel (!%p21_p5) target bundleno = 6 (0x6), region = 119 }
 0x39d   :  { %1579 = vsyncpa [#allocation5], 1 }
 0x39e   :  { %1581 = vsyncpa [#allocation5 + $0x1], 1 }

</bundles_post_ra>
